<compile_context>
chip_gen: v7x
topology: tpu7x:2x2x1
jax: 0.10.0
libtpu: 0.0.40
codegen_flags: <defaults>
</compile_context>

<pallas_src>
import functools

import jax
import jax.numpy as jnp
from jax.experimental import pallas as pl
from jax.experimental.pallas import tpu as pltpu

# ---- module hyperparameters ----
N_EMB = 384          # n_emb
BLOCK_SIZE = 256     # max context (T <= BLOCK_SIZE)
HEAD_SIZE = 64       # head_size used in the demo (n_emb // n_heads)


def head_kernel(x_ref, wqkv_ref, o_ref, *, head_size):
    Bb, T, C = x_ref.shape
    x = x_ref[...].reshape(Bb * T, C).astype(jnp.bfloat16)   # (Bb*T, C) bf16

    # Fused QKV projection: one (Bb*T, C) @ (C, 3*hs) matmul, bf16 in / f32 acc.
    # Weight is already bf16 and already carries the attention scale on the Q columns.
    qkv = jnp.dot(x, wqkv_ref[...],
                  preferred_element_type=jnp.float32)        # (Bb*T, 3*hs) f32
    qkv = qkv.reshape(Bb, T, 3 * head_size)
    q = qkv[:, :, 0 * head_size:1 * head_size].astype(jnp.bfloat16)   # (Bb, T, hs)
    k = qkv[:, :, 1 * head_size:2 * head_size].astype(jnp.bfloat16)
    v = qkv[:, :, 2 * head_size:3 * head_size].astype(jnp.bfloat16)

    # Attention scores (scale already folded into Wq host-side).
    s = jnp.einsum('btd,bsd->bts', q, k,
                   preferred_element_type=jnp.float32)       # (Bb, T, T) f32

    # Causal mask with a large finite negative (avoids -inf NaN edge cases).
    row = jax.lax.broadcasted_iota(jnp.int32, (T, T), 0)
    col = jax.lax.broadcasted_iota(jnp.int32, (T, T), 1)
    s = jnp.where((row >= col)[None, :, :], s, jnp.float32(-1e30))

    # Softmax with deferred normalization: PV matmul on un-normalized exp, then a single
    # (Bb,T,hs)-wide scale by the reciprocal of the row sums (EUP).
    s = s - jnp.max(s, axis=-1, keepdims=True)
    e = jnp.exp(s)                                            # (Bb, T, T) f32
    denom = jnp.sum(e, axis=-1, keepdims=True)                # (Bb, T, 1) f32
    # dropout(weights): eval mode -> identity
    acc = jnp.einsum('bts,bsd->btd', e.astype(jnp.bfloat16), v,
                     preferred_element_type=jnp.float32)      # (Bb, T, hs) f32
    out = acc * pl.reciprocal(denom, approx=True)
    o_ref[...] = out.astype(o_ref.dtype)


def _num_tensorcores():
    """Best-effort count of TensorCores addressable from one device."""
    try:
        kind = jax.devices()[0].device_kind.lower()
    except Exception:
        return 1
    # Chips where a single device drives 2 TensorCores (megacore / v7x).
    for tag in ("v4", "v5p", "v7"):
        if tag in kind:
            return 2
    return 1


def _pick_block_batch(B, T, C, hs, num_cores):
    """Largest divisor of B that (a) keeps >= num_cores grid steps when possible and
    (b) fits a conservative per-step VMEM estimate."""
    want_steps = 2 if num_cores >= 2 else 1

    def fits(bb):  # conservative per-step VMEM estimate (bytes)
        est = (2 * bb * T * C * 4          # double-buffered x block (f32)
               + 2 * bb * T * T * 4        # score + exp temporaries (f32)
               + bb * T * 3 * hs * 4       # qkv projection (f32)
               + 2 * bb * T * hs * 4)      # double-buffered output block (f32)
        return est <= 24 * 1024 * 1024

    best = 1
    for d in range(1, B + 1):
        if B % d != 0:
            continue
        if B // d < want_steps and d != 1:
            continue
        if fits(d):
            best = max(best, d)
    return best


def head_forward(x, wq, wk, wv, block_batch=None):
    B, T, C = x.shape
    hs = wq.shape[1]
    scale = C ** (-0.5)   # nanoGPT scales by C (=n_emb), not head_size

    # Fuse + scale + cast the weights host-side (weights, not per-call activations).
    wqkv = jnp.concatenate([wq * scale, wk, wv], axis=1).astype(jnp.bfloat16)  # (C, 3*hs)

    if block_batch is not None:
        Bb = block_batch
    else:
        Bb = _pick_block_batch(B, T, C, hs, _num_tensorcores())
    assert B % Bb == 0, "batch must be divisible by block_batch"

    kernel = functools.partial(head_kernel, head_size=hs)

    return pl.pallas_call(
        kernel,
        out_shape=jax.ShapeDtypeStruct((B, T, hs), jnp.float32),
        grid_spec=pltpu.PrefetchScalarGridSpec(
            num_scalar_prefetch=0,
            grid=(B // Bb,),
            in_specs=[
                pl.BlockSpec((Bb, T, C), lambda b: (b, 0, 0)),      # x block
                pl.BlockSpec((C, 3 * hs), lambda b: (0, 0)),        # resident fused QKV weight
            ],
            out_specs=pl.BlockSpec((Bb, T, hs), lambda b: (b, 0, 0)),
        ),
        compiler_params=pltpu.CompilerParams(
            dimension_semantics=("parallel",),
            vmem_limit_bytes=32 * 1024 * 1024,   # safe on v5e/v6e/v7x
        ),
    )(x, wqkv)


def head_reference(x, wq, wk, wv):
    """Pure-JAX f32 reference mirroring the PyTorch Head.forward (eval mode)."""
    B, T, C = x.shape
    k = x @ wk
    q = x @ wq
    w = (q @ jnp.swapaxes(k, -1, -2)) * (C ** (-0.5))
    mask = jnp.tril(jnp.ones((T, T), bool))
    w = jnp.where(mask, w, -jnp.inf)
    w = jax.nn.softmax(w, axis=-1)
    v = x @ wv
    return w @ v


if __name__ == "__main__":
    key = jax.random.PRNGKey(0)
    kx, kq, kk, kv = jax.random.split(key, 4)

    B, T, HS = 4, 64, HEAD_SIZE        # T <= block_size (256)
    s = 0.02
    x = jax.random.normal(kx, (B, T, N_EMB), jnp.float32)
    # PyTorch Linear stores (out, in); weights are pre-transposed so kernel does x @ W.
    wq = s * jax.random.normal(kq, (N_EMB, HS), jnp.float32)
    wk = s * jax.random.normal(kk, (N_EMB, HS), jnp.float32)
    wv = s * jax.random.normal(kv, (N_EMB, HS), jnp.float32)

    out = jax.block_until_ready(head_forward(x, wq, wk, wv))
    ref = head_reference(x, wq, wk, wv)

    assert out.shape == (B, T, HS)
    max_err = jnp.max(jnp.abs(out - ref))
    # bf16 matmul operands (f32 accumulation) + approx reciprocal => loosened tolerance.
    assert jnp.allclose(out, ref, rtol=2e-2, atol=2e-2), f"max err {max_err}"
    print("KERNEL_OK")
</pallas_src>

<mosaic_0001>
module attributes {stable_mosaic.version = 11 : i64} {
  func.func @head_kernel(%arg0: i32, %arg1: memref<4x64x384xf32, #tpu.memory_space<vmem>>, %arg2: memref<384x192xbf16, #tpu.memory_space<vmem>>, %arg3: memref<4x64x64xf32, #tpu.memory_space<vmem>>) attributes {dimension_semantics = [#tpu.dimension_semantics<parallel>], iteration_bounds = array<i64: 1>, scalar_prefetch = 0 : i64, scratch_operands = 0 : i64, tpu.core_type = #tpu.core_type<tc>, window_params = [{transform_indices = @transform_0, window_bounds = array<i64: 4, 64, 384>}, {pipeline_mode = #tpu.pipeline_mode<synchronous>, transform_indices = @transform_1, window_bounds = array<i64: 384, 192>}, {transform_indices = @transform_2, window_bounds = array<i64: 4, 64, 64>}]} {
    %c0 = arith.constant 0 : index
    %c0_0 = arith.constant 0 : index
    %c0_1 = arith.constant 0 : index
    %0 = vector.load %arg1[%c0, %c0_0, %c0_1] : memref<4x64x384xf32, #tpu.memory_space<vmem>>, vector<4x64x384xf32>
    %1 = vector.shape_cast %0 : vector<4x64x384xf32> to vector<256x384xf32>
    %2 = arith.truncf %1 : vector<256x384xf32> to vector<256x384xbf16>
    %c0_2 = arith.constant 0 : index
    %c0_3 = arith.constant 0 : index
    %3 = vector.load %arg2[%c0_2, %c0_3] : memref<384x192xbf16, #tpu.memory_space<vmem>>, vector<384x192xbf16>
    %cst = arith.constant dense<0.000000e+00> : vector<256x192xf32>
    %4 = tpu.matmul %2, %3, %cst {dimension_numbers = #tpu.dot_dimension_numbers<[1], [0], [0], [1], [0, 0, 1, 1], [], []>} : vector<256x384xbf16>, vector<384x192xbf16>, vector<256x192xf32> -> vector<256x192xf32>
    %5 = vector.shape_cast %4 : vector<256x192xf32> to vector<4x64x192xf32>
    %6 = vector.extract_strided_slice %5 {offsets = [0, 0, 0], sizes = [4, 64, 64], strides = [1, 1, 1]} : vector<4x64x192xf32> to vector<4x64x64xf32>
    %7 = arith.truncf %6 : vector<4x64x64xf32> to vector<4x64x64xbf16>
    %8 = vector.extract_strided_slice %5 {offsets = [0, 0, 64], sizes = [4, 64, 64], strides = [1, 1, 1]} : vector<4x64x192xf32> to vector<4x64x64xf32>
    %9 = arith.truncf %8 : vector<4x64x64xf32> to vector<4x64x64xbf16>
    %10 = vector.extract_strided_slice %5 {offsets = [0, 0, 128], sizes = [4, 64, 64], strides = [1, 1, 1]} : vector<4x64x192xf32> to vector<4x64x64xf32>
    %11 = arith.truncf %10 : vector<4x64x64xf32> to vector<4x64x64xbf16>
    "tpu.trace_start"() <{level = 10 : i32, message = "btd,bsd->bts"}> : () -> ()
    %cst_4 = arith.constant dense<0.000000e+00> : vector<4x64x64xf32>
    %12 = tpu.matmul %7, %9, %cst_4 {dimension_numbers = #tpu.dot_dimension_numbers<[2], [2], [1], [1], [0, 0, 0, 1, 1, 1], [0], [0]>} : vector<4x64x64xbf16>, vector<4x64x64xbf16>, vector<4x64x64xf32> -> vector<4x64x64xf32>
    "tpu.trace_stop"() : () -> ()
    %13 = tpu.iota {dimensions = array<i32: 0>} : vector<64x64xi32>
    %14 = tpu.iota {dimensions = array<i32: 1>} : vector<64x64xi32>
    %15 = arith.cmpi sge, %13, %14 : vector<64x64xi32>
    %16 = vector.shape_cast %15 : vector<64x64xi1> to vector<1x64x64xi1>
    %cst_5 = arith.constant -1.000000e+30 : f32
    %17 = vector.shape_cast %16 : vector<1x64x64xi1> to vector<1x64x64xi1>
    %18 = vector.broadcast %17 : vector<1x64x64xi1> to vector<4x64x64xi1>
    %19 = vector.broadcast %cst_5 : f32 to vector<4x64x64xf32>
    %20 = arith.select %18, %12, %19 : vector<4x64x64xi1>, vector<4x64x64xf32>
    %cst_6 = arith.constant dense<0xFF800000> : vector<4x64xf32>
    %21 = vector.multi_reduction <maximumf>, %20, %cst_6 [2] : vector<4x64x64xf32> to vector<4x64xf32>
    %22 = vector.shape_cast %21 : vector<4x64xf32> to vector<4x64x1xf32>
    %23 = vector.broadcast %22 : vector<4x64x1xf32> to vector<4x64x64xf32>
    %24 = arith.subf %20, %23 : vector<4x64x64xf32>
    %25 = math.exp %24 : vector<4x64x64xf32>
    %cst_7 = arith.constant dense<0.000000e+00> : vector<4x64xf32>
    %26 = vector.multi_reduction <add>, %25, %cst_7 [2] : vector<4x64x64xf32> to vector<4x64xf32>
    %27 = vector.shape_cast %26 : vector<4x64xf32> to vector<4x64x1xf32>
    %28 = arith.truncf %25 : vector<4x64x64xf32> to vector<4x64x64xbf16>
    "tpu.trace_start"() <{level = 10 : i32, message = "bts,bsd->btd"}> : () -> ()
    %cst_8 = arith.constant dense<0.000000e+00> : vector<4x64x64xf32>
    %29 = tpu.matmul %28, %11, %cst_8 {dimension_numbers = #tpu.dot_dimension_numbers<[2], [1], [1], [2], [0, 0, 0, 1, 1, 2], [0], [0]>} : vector<4x64x64xbf16>, vector<4x64x64xbf16>, vector<4x64x64xf32> -> vector<4x64x64xf32>
    "tpu.trace_stop"() : () -> ()
    %30 = tpu.reciprocal %27 {approx = true} : vector<4x64x1xf32> -> vector<4x64x1xf32>
    %31 = vector.broadcast %30 : vector<4x64x1xf32> to vector<4x64x64xf32>
    %32 = arith.mulf %29, %31 : vector<4x64x64xf32>
    %c0_9 = arith.constant 0 : index
    %c0_10 = arith.constant 0 : index
    %c0_11 = arith.constant 0 : index
    %33 = vector.load %arg3[%c0_9, %c0_10, %c0_11] : memref<4x64x64xf32, #tpu.memory_space<vmem>>, vector<4x64x64xf32>
    tpu.vector_store %arg3[%c0_9, %c0_10, %c0_11], %32 {strides = array<i32>} : memref<4x64x64xf32, #tpu.memory_space<vmem>>, vector<4x64x64xf32>,
    return
  }
  func.func @transform_0(%arg0: i32) -> (i32, i32, i32) {
    %c0_i32 = arith.constant 0 : i32
    %c0_i32_0 = arith.constant 0 : i32
    %c0_i32_1 = arith.constant 0 : i32
    return %arg0, %c0_i32, %c0_i32_0 : i32, i32, i32
  }
  func.func @transform_1(%arg0: i32) -> (i32, i32) {
    %c0_i32 = arith.constant 0 : i32
    %c0_i32_0 = arith.constant 0 : i32
    %c0_i32_1 = arith.constant 0 : i32
    return %c0_i32, %c0_i32_0 : i32, i32
  }
  func.func @transform_2(%arg0: i32) -> (i32, i32, i32) {
    %c0_i32 = arith.constant 0 : i32
    %c0_i32_0 = arith.constant 0 : i32
    %c0_i32_1 = arith.constant 0 : i32
    return %arg0, %c0_i32, %c0_i32_0 : i32, i32, i32
  }
}

</mosaic_0001>

<bundles_post_ra>
// kernel: tpu_custom_call.1
= control target key start
LH: loop header
LB: loop body
LE: loop exit
PB: predicated region body
PF: predicated region fallthrough
CT: control target
= control target key end

     0   :  { %7 = vsyncpa [#allocation3], 0  ;;  %s3542_s0 = inlined_call_operand.hbm [shape: f32[4,64,384], index: 0, kind: input, shape index: {}]   ;;  %s3543_s1 = inlined_call_operand.vmem [shape: bf16[384,192], index: 1, kind: input, shape index: {}]   ;;  %s3544_s2 = inlined_call_operand.hbm [shape: f32[4,64,64], index: 2, kind: output, shape index: {}]  }
   0x1   :  { %8 = vsyncpa [#allocation4], 0  ;;  %s2698_s9 = smov [#allocation2]   ;;  %s2650_s13 = scalar_lea.hbm %s3542_s0, 12288 }
   0x2   :  { %s14_s10 = sshll.u32 %s2698_s9, 4  ;;  %p2651_p0 = scmp.ne.s32.totalorder %s3542_s0, %s2650_s13  ;;  %s15_s10 = int_to_ptr.vmem [resolvable:$true] %s14_s10 }
   0x3   :  { %p2654_p1 = scmp.lt.u32.totalorder %s2650_s13, %s3542_s0 }
   0x5   :  { %p2656_p2 = pnand %p2654_p1, %p2651_p0 }
   0x7   :  { %2659 = shalt.err (!%p2656_p2)
}
   0x8   :  { %s2660_s18 = scalar_lea.vmem %s15_s10, 12288  ;;  %p2665_p4 = scmp.lt.s32.totalorder %s15_s10, %s15_s10 }
   0x9   :  { %p2661_p3 = scmp.ne.s32.totalorder %s15_s10, %s2660_s18  ;;  %p2666_p5 = scmp.lt.s32.totalorder %s2660_s18, %s2660_s18 }
   0xb   :  { %p2667_p6 = por %p2666_p5, %p2665_p4 }
   0xd   :  { %p2668_p7 = pnand %p2667_p6, %p2661_p3 }
   0xf   :  { %2671 = shalt.err (!%p2668_p7)
}
  0x10   :  { %s2699_s19 = smov 384   ;;  %s2700_s20 = smov 24  }
  0x11   :  { %20 = dma.hbm_to_vmem [thread:$0]  %s3542_s0, 12288, %s15_s10, [#allocation3], %s2699_s19, %s2699_s19, %s2700_s20  }
  0x12   :  { %2694 = dma.done.wait [#allocation3], 12288  }
  0x13   :  { %2695 = vsyncadd [#allocation3], 4294955008  ;;  %v2450_v0 = vld [vmem:[%s3543_s1 + $0x4] ss:$8 sps:$4 sm:$0xff]   ;;  %v2452_v1 = vld [vmem:[%s3543_s1] ss:$8 sps:$4 sm:$0xff]  }
  0x14   :  { %459 = vmatprep.subr.bf16.mxu0 %v2450_v0  ;;  %v2453_v2 = vld [vmem:[%s3543_s1 + $0x14] ss:$8 sps:$4 sm:$0xff]   ;;  %v2455_v3 = vld [vmem:[%s3543_s1 + $0x10] ss:$8 sps:$4 sm:$0xff]   ;;  %v2456_v4 = vld [vmem:[%s3543_s1 + $0x24] ss:$8 sps:$4 sm:$0xff]  }
  0x15   :  { %460 = vmatpush1.bf16.msra.mxu0 %v2452_v1  ;;  %v2701_v5 = vmov 0   ;;  %v2458_v6 = vld [vmem:[%s3543_s1 + $0x20] ss:$8 sps:$4 sm:$0xff]   ;;  %v2459_v7 = vld [vmem:[%s3543_s1 + $0x34] ss:$8 sps:$4 sm:$0xff]   ;;  %vm889_vm0 = vcmask 523264  }
  0x16   :  { %461 = vmatprep.subr.bf16.mxu0 %v2453_v2  ;;  %774 = vmatprep.mubr.bf16.mxu1 %v2701_v5  ;;  %v2461_v8 = vld [vmem:[%s3543_s1 + $0x30] ss:$8 sps:$4 sm:$0xff]   ;;  %v2462_v9 = vld [vmem:[%s3543_s1 + $0x44] ss:$8 sps:$4 sm:$0xff]   ;;  %v2464_v10 = vld [vmem:[%s3543_s1 + $0x40] ss:$8 sps:$4 sm:$0xff]  }
  0x17   :  { %v2465_v11 = vld [vmem:[%s3543_s1 + $0x54] ss:$8 sps:$4 sm:$0xff]   ;;  %v2467_v12 = vld [vmem:[%s3543_s1 + $0x50] ss:$8 sps:$4 sm:$0xff]   ;;  %v2468_v13 = vld [vmem:[%s3543_s1 + $0x64] ss:$8 sps:$4 sm:$0xff]  }
  0x18   :  { %v28_v14 = vld [vmem:[#allocation2 + $0x8] sm:$0xff]  ;;  %v31_v15 = vld [vmem:[#allocation2 + $0x20] sm:$0xff]  ;;  %v2471_v18 = vld [vmem:[%s3543_s1 + $0x74] ss:$8 sps:$4 sm:$0xff]   ;;  %s2703_s3 = smov [#allocation5]  }
  0x19   :  { %462 = vmatpush1.bf16.msra.mxu0 %v2455_v3  ;;  %v124_v16 = vpack.c.bf16 %v31_v15, %v28_v14  ;;  %v2470_v17 = vld [vmem:[%s3543_s1 + $0x60] ss:$8 sps:$4 sm:$0xff]   ;;  %v2473_v20 = vld [vmem:[%s3543_s1 + $0x70] ss:$8 sps:$4 sm:$0xff]   ;;  %v2790_v21 = vld [vmem:[%s3543_s1 + $0x104] ss:$8 sps:$4 sm:$0xff]  }
  0x1a   :  { %463 = vmatprep.subr.bf16.mxu0 %v2456_v4  ;;  %v2782_v19 = vld [vmem:[%s3543_s1 + $0x100] ss:$8 sps:$4 sm:$0xff]   ;;  %v2474_v22 = vld [vmem:[%s3543_s1 + $0x84] ss:$8 sps:$4 sm:$0xff]   ;;  %2346 = vmatprep.subr.bf16.mxu1 %v2790_v21  ;;  %v2799_v23 = vld [vmem:[%s3543_s1 + $0x110] ss:$8 sps:$4 sm:$0xff]  }
  0x1b   :  { %491 = vmatprep.mubr.bf16.mxu0 %v124_v16  ;;  %2354 = vmatpush1.bf16.msra.mxu1 %v2782_v19  ;;  %v2476_v24 = vld [vmem:[%s3543_s1 + $0x80] ss:$8 sps:$4 sm:$0xff]   ;;  %v2808_v25 = vld [vmem:[%s3543_s1 + $0x114] ss:$8 sps:$4 sm:$0xff]   ;;  %v2818_v27 = vld [vmem:[%s3543_s1 + $0x124] ss:$8 sps:$4 sm:$0xff]  }
  0x1c   :  { %v2477_v26 = vld [vmem:[%s3543_s1 + $0x94] ss:$8 sps:$4 sm:$0xff]   ;;  %2347 = vmatprep.subr.bf16.mxu1 %v2808_v25  ;;  %v2823_v28 = vld [vmem:[%s3543_s1 + $0x120] ss:$8 sps:$4 sm:$0xff]   ;;  %v2479_v29 = vld [vmem:[%s3543_s1 + $0x90] ss:$8 sps:$4 sm:$0xff]  }
  0x1d   :  { %464 = vmatpush1.bf16.msra.mxu0 %v2458_v6  ;;  %v2831_v30 = vld [vmem:[%s3543_s1 + $0x134] ss:$8 sps:$4 sm:$0xff]   ;;  %v2480_v31 = vld [vmem:[%s3543_s1 + $0xa4] ss:$8 sps:$4 sm:$0xff]   ;;  %v2841_v32 = vld [vmem:[%s3543_s1 + $0x130] ss:$8 sps:$4 sm:$0xff]  }
  0x1e   :  { %465 = vmatprep.subr.bf16.mxu0 %v2459_v7  ;;  %v2482_v33 = vld [vmem:[%s3543_s1 + $0xa0] ss:$8 sps:$4 sm:$0xff]   ;;  %v2850_v34 = vld [vmem:[%s3543_s1 + $0x144] ss:$8 sps:$4 sm:$0xff]   ;;  %v2483_v35 = vld [vmem:[%s3543_s1 + $0xb4] ss:$8 sps:$4 sm:$0xff]  }
  0x1f   :  { %2355 = vmatpush1.bf16.msra.mxu1 %v2799_v23  ;;  %v2859_v36 = vld [vmem:[%s3543_s1 + $0x140] ss:$8 sps:$4 sm:$0xff]   ;;  %v2485_v37 = vld [vmem:[%s3543_s1 + $0xb0] ss:$8 sps:$4 sm:$0xff]   ;;  %v2868_v38 = vld [vmem:[%s3543_s1 + $0x154] ss:$8 sps:$4 sm:$0xff]  }
  0x20   :  { %2348 = vmatprep.subr.bf16.mxu1 %v2818_v27  ;;  %v2486_v39 = vld [vmem:[%s3543_s1 + $0xc4] ss:$8 sps:$4 sm:$0xff]   ;;  %v2877_v40 = vld [vmem:[%s3543_s1 + $0x150] ss:$8 sps:$4 sm:$0xff]   ;;  %v2488_v41 = vld [vmem:[%s3543_s1 + $0xc0] ss:$8 sps:$4 sm:$0xff]  }
  0x21   :  { %466 = vmatpush1.bf16.msra.mxu0 %v2461_v8  ;;  %v2886_v42 = vld [vmem:[%s3543_s1 + $0x164] ss:$8 sps:$4 sm:$0xff]   ;;  %v2489_v43 = vld [vmem:[%s3543_s1 + $0xd4] ss:$8 sps:$4 sm:$0xff]   ;;  %v2895_v44 = vld [vmem:[%s3543_s1 + $0x160] ss:$8 sps:$4 sm:$0xff]  }
  0x22   :  { %467 = vmatprep.subr.bf16.mxu0 %v2462_v9  ;;  %v2491_v45 = vld [vmem:[%s3543_s1 + $0xd0] ss:$8 sps:$4 sm:$0xff]   ;;  %v2904_v46 = vld [vmem:[%s3543_s1 + $0x174] ss:$8 sps:$4 sm:$0xff]   ;;  %v2492_v47 = vld [vmem:[%s3543_s1 + $0xe4] ss:$8 sps:$4 sm:$0xff]  }
  0x23   :  { %2356 = vmatpush1.bf16.msra.mxu1 %v2823_v28  ;;  %v2913_v48 = vld [vmem:[%s3543_s1 + $0x170] ss:$8 sps:$4 sm:$0xff]   ;;  %v83_v49 = vld [vmem:[#allocation2 + $0x1c0] sm:$0xff]  ;;  %v2495_v52 = vld [vmem:[%s3543_s1 + $0xf4] ss:$8 sps:$4 sm:$0xff]   ;;  %s2062_s4 = sshll.u32 %s2703_s3, 4  ;;  %s2063_s4 = int_to_ptr.vmem [resolvable:$true] %s2062_s4 }
  0x24   :  { %2349 = vmatprep.subr.bf16.mxu1 %v2831_v30  ;;  %v86_v50 = vld [vmem:[#allocation2 + $0x1d8] sm:$0xff]  ;;  %v2494_v51 = vld [vmem:[%s3543_s1 + $0xe0] ss:$8 sps:$4 sm:$0xff]   ;;  %v37_v58 = vld [vmem:[#allocation2 + $0x50] sm:$0xff]  ;;  %s2672_s5 = scalar_lea.vmem %s2063_s4, 4096  ;;  %p2677_p9 = scmp.lt.s32.totalorder %s2063_s4, %s2063_s4 }
  0x25   :  { %468 = vmatpush1.bf16.msra.mxu0 %v2464_v10  ;;  %v152_v53 = vpack.c.bf16 %v86_v50, %v83_v49  ;;  %v2497_v54 = vld [vmem:[%s3543_s1 + $0xf0] ss:$8 sps:$4 sm:$0xff]   ;;  %v27_v55 = vld [vmem:[#allocation2] sm:$0xff]  ;;  %v92_v61 = vld [vmem:[#allocation2 + $0x208] sm:$0xff]  ;;  %s2702_s1 = smov 64   ;;  %p2673_p8 = scmp.ne.s32.totalorder %s2063_s4, %s2672_s5 }
  0x26   :  { %469 = vmatprep.subr.bf16.mxu0 %v2465_v11  ;;  %v30_v56 = vld [vmem:[#allocation2 + $0x18] sm:$0xff]  ;;  %v89_v60 = vld [vmem:[#allocation2 + $0x1f0] sm:$0xff]  ;;  %v36_v1 = vld [vmem:[#allocation2 + $0x48] sm:$0xff]  ;;  %p2678_p10 = scmp.lt.s32.totalorder %s2672_s5, %s2672_s5 }
  0x27   :  { %2357 = vmatpush1.bf16.msra.mxu1 %v2841_v32  ;;  %v34_v57 = vld [vmem:[#allocation2 + $0x38] sm:$0xff]  ;;  %v123_v59 = vpack.c.bf16 %v30_v56, %v27_v55  ;;  %v155_v63 = vpack.c.bf16 %v92_v61, %v89_v60  ;;  %v33_v0 = vld [vmem:[#allocation2 + $0x30] sm:$0xff]  ;;  %v40_v2 = vld [vmem:[#allocation2 + $0x68] sm:$0xff] }
  0x28   :  { %2350 = vmatprep.subr.bf16.mxu1 %v2850_v34  ;;  %v127_v62 = vpack.c.bf16 %v37_v58, %v34_v57  ;;  %v43_v3 = vld [vmem:[#allocation2 + $0x80] sm:$0xff]  ;;  %v126_v4 = vpack.c.bf16 %v36_v1, %v33_v0  ;;  %v98_v7 = vld [vmem:[#allocation2 + $0x238] sm:$0xff]  ;;  %v101_v15 = vld [vmem:[#allocation2 + $0x250] sm:$0xff]  ;;  %p2679_p11 = por %p2678_p10, %p2677_p9 }
  0x29   :  { %470 = vmatpush1.bf16.msra.mxu0 %v2467_v12  ;;  %v95_v6 = vld [vmem:[#allocation2 + $0x220] sm:$0xff]  ;;  %v130_v8 = vpack.c.bf16 %v43_v3, %v40_v2  ;;  %v42_v11 = vld [vmem:[#allocation2 + $0x78] sm:$0xff]  ;;  %v104_v16 = vld [vmem:[#allocation2 + $0x268] sm:$0xff] }
  0x2a   :  { %471 = vmatprep.subr.bf16.mxu0 %v2468_v13  ;;  %v158_v9 = vpack.c.bf16 %v98_v7, %v95_v6  ;;  %v39_v10 = vld [vmem:[#allocation2 + $0x60] sm:$0xff]  ;;  %v46_v12 = vld [vmem:[#allocation2 + $0x98] sm:$0xff]  ;;  %v49_v13 = vld [vmem:[#allocation2 + $0xb0] sm:$0xff]  ;;  %p2680_p12 = pnand %p2679_p11, %p2673_p8 }
  0x2b   :  { %2358 = vmatpush1.bf16.msra.mxu1 %v2859_v36  ;;  %v129_v14 = vpack.c.bf16 %v42_v11, %v39_v10  ;;  %v73_v49 = vld [vmem:[#allocation2 + $0x170] sm:$0xff]  ;;  %v79_v55 = vld [vmem:[#allocation2 + $0x1a0] sm:$0xff]  ;;  %v82_v60 = vld [vmem:[#allocation2 + $0x1b8] sm:$0xff] }
  0x2c   :  { %2351 = vmatprep.subr.bf16.mxu1 %v2868_v38  ;;  %v75_v58 = vld [vmem:[#allocation2 + $0x180] sm:$0xff]  ;;  %v85_v61 = vld [vmem:[#allocation2 + $0x1d0] sm:$0xff]  ;;  %v84_v1 = vld [vmem:[#allocation2 + $0x1c8] sm:$0xff] }
  0x2d   :  { %472 = vmatpush1.bf16.msra.mxu0 %v2470_v17  ;;  %v133_v17 = vpack.c.bf16 %v49_v13, %v46_v12  ;;  %v81_v0 = vld [vmem:[#allocation2 + $0x1b0] sm:$0xff]  ;;  %v88_v2 = vld [vmem:[#allocation2 + $0x1e8] sm:$0xff]  ;;  %v91_v3 = vld [vmem:[#allocation2 + $0x200] sm:$0xff] }
  0x2e   :  { %473 = vmatprep.subr.bf16.mxu0 %v2471_v18  ;;  %v161_v18 = vpack.c.bf16 %v104_v16, %v101_v15  ;;  %v154_v6 = vpack.c.bf16 %v91_v3, %v88_v2  ;;  %v87_v7 = vld [vmem:[#allocation2 + $0x1e0] sm:$0xff]  ;;  %v97_v10 = vld [vmem:[#allocation2 + $0x230] sm:$0xff]  ;;  %v100_v15 = vld [vmem:[#allocation2 + $0x248] sm:$0xff] }
  0x2f   :  { %2359 = vmatpush1.bf16.msra.mxu1 %v2877_v40  ;;  %v93_v13 = vld [vmem:[#allocation2 + $0x210] sm:$0xff]  ;;  %v103_v16 = vld [vmem:[#allocation2 + $0x260] sm:$0xff] }
  0x30   :  { %2352 = vmatprep.subr.bf16.mxu1 %v2886_v42 }
  0x31   :  { %474 = vmatpush1.bf16.msra.mxu0 %v2473_v20  ;;  %v48_v20 = vld [vmem:[#allocation2 + $0xa8] sm:$0xff] }
  0x32   :  { %475 = vmatprep.subr.bf16.mxu0 %v2474_v22  ;;  %v55_v22 = vld [vmem:[#allocation2 + $0xe0] sm:$0xff] }
  0x33   :  { %2360 = vmatpush1.bf16.msra.mxu1 %v2895_v44 }
  0x34   :  { %2353 = vmatprep.subr.bf16.mxu1 %v2904_v46 }
  0x35   :  { %476 = vmatpush1.bf16.msra.mxu0 %v2476_v24  ;;  %v107_v24 = vld [vmem:[#allocation2 + $0x280] sm:$0xff] }
  0x36   :  { %477 = vmatprep.subr.bf16.mxu0 %v2477_v26 }
  0x37   :  { %2361 = vmatpush1.bf16.msra.mxu1 %v2913_v48 }
  0x39   :  { %478 = vmatpush1.bf16.msra.mxu0 %v2479_v29  ;;  %v54_v29 = vld [vmem:[#allocation2 + $0xd8] sm:$0xff] }
  0x3a   :  { %479 = vmatprep.subr.bf16.mxu0 %v2480_v31  ;;  %775 = vmatmul.mubr.bf16.vlgmr.msra.gmra.mrb[0].mxu1 %v152_v53  ;;  %v61_v31 = vld [vmem:[#allocation2 + $0x110] sm:$0xff]  ;;  %v72_v53 = vld [vmem:[#allocation2 + $0x168] sm:$0xff] }
  0x3b   :  { %784 = vmatprep.mubr.bf16.mxu1 %v2701_v5 }
  0x3d   :  { %480 = vmatpush1.bf16.msra.mxu0 %v2482_v33  ;;  %v113_v33 = vld [vmem:[#allocation2 + $0x2b0] sm:$0xff] }
  0x3e   :  { %481 = vmatprep.subr.bf16.mxu0 %v2483_v35 }
  0x41   :  { %482 = vmatpush1.bf16.msra.mxu0 %v2485_v37  ;;  %v57_v37 = vld [vmem:[#allocation2 + $0xf0] sm:$0xff] }
  0x42   :  { %483 = vmatprep.subr.bf16.mxu0 %v2486_v39  ;;  %785 = vmatmul.mubr.bf16.gmra.mrb[4].mxu1 %v155_v63  ;;  %v64_v39 = vld [vmem:[#allocation2 + $0x128] sm:$0xff]  ;;  %v151_v63 = vpack.c.bf16 %v85_v61, %v82_v60  ;;  %v71_v61 = vld [vmem:[#allocation2 + $0x160] sm:$0xff] }
  0x43   :  { %794 = vmatprep.mubr.bf16.mxu1 %v2701_v5 }
  0x45   :  { %484 = vmatpush1.bf16.msra.mxu0 %v2488_v41 }
  0x46   :  { %485 = vmatprep.subr.bf16.mxu0 %v2489_v43  ;;  %v122_v43 = vld [vmem:[#allocation2 + $0x2f8] sm:$0xff] }
  0x49   :  { %486 = vmatpush1.bf16.msra.mxu0 %v2491_v45 }
  0x4a   :  { %487 = vmatprep.subr.bf16.mxu0 %v2492_v47  ;;  %795 = vmatmul.mubr.bf16.gmra.mrb[8].mxu1 %v158_v9  ;;  %v66_v47 = vld [vmem:[#allocation2 + $0x138] sm:$0xff] }
  0x4b   :  { %804 = vmatprep.mubr.bf16.mxu1 %v2701_v5  ;;  %v94_v9 = vld [vmem:[#allocation2 + $0x218] sm:$0xff] }
  0x4c   :  { %v157_v12 = vpack.c.bf16 %v97_v10, %v94_v9 }
  0x4d   :  { %488 = vmatpush1.bf16.msra.mxu0 %v2494_v51 }
  0x4e   :  { %489 = vmatprep.subr.bf16.mxu0 %v2495_v52  ;;  %v69_v52 = vld [vmem:[#allocation2 + $0x150] sm:$0xff] }
  0x4f   :  { %v144_v56 = vpack.c.bf16 %v72_v53, %v69_v52  ;;  %v53_v52 = vld [vmem:[#allocation2 + $0xd0] sm:$0xff]  ;;  %v56_v53 = vld [vmem:[#allocation2 + $0xe8] sm:$0xff] }
  0x51   :  { %490 = vmatpush1.bf16.msra.mxu0 %v2497_v54  ;;  %v76_v54 = vld [vmem:[#allocation2 + $0x188] sm:$0xff] }
  0x52   :  { %652 = vmatprep.subr.bf16.mxu0 %v2790_v21  ;;  %v52_v21 = vld [vmem:[#allocation2 + $0xc8] sm:$0xff]  ;;  %805 = vmatmul.mubr.bf16.gmra.mrb[12].mxu1 %v161_v18  ;;  %v148_v57 = vpack.c.bf16 %v79_v55, %v76_v54  ;;  %v160_v18 = vpack.c.bf16 %v103_v16, %v100_v15  ;;  %v137_v54 = vpack.c.bf16 %v56_v53, %v53_v52  ;;  %v59_v55 = vld [vmem:[#allocation2 + $0x100] sm:$0xff] }
  0x53   :  { %814 = vmatprep.mubr.bf16.mxu1 %v2701_v5  ;;  %v136_v26 = vpack.c.bf16 %v55_v22, %v52_v21  ;;  %v106_v21 = vld [vmem:[#allocation2 + $0x278] sm:$0xff]  ;;  %v109_v22 = vld [vmem:[#allocation2 + $0x290] sm:$0xff] }
  0x54   :  { %492 = vmatmul.mubr.bf16.vlgmr.msra.gmra.mrb[0].mxu0 %v123_v59  ;;  %v78_v59 = vld [vmem:[#allocation2 + $0x198] sm:$0xff] }
  0x55   :  { %501 = vmatprep.mubr.bf16.mxu0 %v127_v62  ;;  %653 = vmatpush1.bf16.msra.mxu0 %v2782_v19  ;;  %v45_v19 = vld [vmem:[#allocation2 + $0x90] sm:$0xff]  ;;  %v147_v62 = vpack.c.bf16 %v78_v59, %v75_v58  ;;  %v68_v59 = vld [vmem:[#allocation2 + $0x148] sm:$0xff] }
  0x56   :  { %654 = vmatprep.subr.bf16.mxu0 %v2808_v25  ;;  %v110_v25 = vld [vmem:[#allocation2 + $0x298] sm:$0xff]  ;;  %v65_v58 = vld [vmem:[#allocation2 + $0x130] sm:$0xff] }
  0x57   :  { %v143_v60 = vpack.c.bf16 %v68_v59, %v65_v58 }
  0x59   :  { %655 = vmatpush1.bf16.msra.mxu0 %v2799_v23  ;;  %v132_v23 = vpack.c.bf16 %v48_v20, %v45_v19  ;;  %v99_v19 = vld [vmem:[#allocation2 + $0x240] sm:$0xff]  ;;  %v102_v20 = vld [vmem:[#allocation2 + $0x258] sm:$0xff] }
  0x5a   :  { %656 = vmatprep.subr.bf16.mxu0 %v2818_v27  ;;  %v164_v27 = vpack.c.bf16 %v110_v25, %v107_v24  ;;  %v163_v24 = vpack.c.bf16 %v109_v22, %v106_v21  ;;  %v105_v25 = vld [vmem:[#allocation2 + $0x270] sm:$0xff] }
  0x5c   :  { %502 = vmatmul.mubr.bf16.gmra.mrb[4].mxu0 %v126_v4  ;;  %815 = vmatmul.mubr.bf16.gmra.mrb[16].mxu1 %v164_v27  ;;  %v150_v4 = vpack.c.bf16 %v84_v1, %v81_v0  ;;  %v112_v27 = vld [vmem:[#allocation2 + $0x2a8] sm:$0xff]  ;;  %v77_v0 = vld [vmem:[#allocation2 + $0x190] sm:$0xff] }
  0x5d   :  { %511 = vmatprep.mubr.bf16.mxu0 %v130_v8  ;;  %657 = vmatpush1.bf16.msra.mxu0 %v2823_v28  ;;  %v51_v28 = vld [vmem:[#allocation2 + $0xc0] sm:$0xff]  ;;  %v90_v8 = vld [vmem:[#allocation2 + $0x1f8] sm:$0xff]  ;;  %v80_v1 = vld [vmem:[#allocation2 + $0x1a8] sm:$0xff] }
  0x5e   :  { %658 = vmatprep.subr.bf16.mxu0 %v2831_v30  ;;  %v58_v30 = vld [vmem:[#allocation2 + $0xf8] sm:$0xff]  ;;  %824 = vmatprep.mubr.bf16.mxu1 %v2701_v5  ;;  %v153_v11 = vpack.c.bf16 %v90_v8, %v87_v7  ;;  %v149_v2 = vpack.c.bf16 %v80_v1, %v77_v0 }
  0x5f   :  { %v139_v35 = vpack.c.bf16 %v61_v31, %v58_v30  ;;  %v111_v31 = vld [vmem:[#allocation2 + $0x2a0] sm:$0xff] }
  0x61   :  { %659 = vmatpush1.bf16.msra.mxu0 %v2841_v32  ;;  %v135_v32 = vpack.c.bf16 %v54_v29, %v51_v28  ;;  %v115_v28 = vld [vmem:[#allocation2 + $0x2c0] sm:$0xff] }
  0x62   :  { %660 = vmatprep.subr.bf16.mxu0 %v2850_v34  ;;  %v116_v34 = vld [vmem:[#allocation2 + $0x2c8] sm:$0xff]  ;;  %v166_v30 = vpack.c.bf16 %v115_v28, %v112_v27 }
  0x64   :  { %512 = vmatmul.mubr.bf16.gmra.mrb[8].mxu0 %v129_v14  ;;  %v96_v14 = vld [vmem:[#allocation2 + $0x228] sm:$0xff] }
  0x65   :  { %521 = vmatprep.mubr.bf16.mxu0 %v133_v17  ;;  %661 = vmatpush1.bf16.msra.mxu0 %v2859_v36  ;;  %v167_v36 = vpack.c.bf16 %v116_v34, %v113_v33  ;;  %v156_v17 = vpack.c.bf16 %v96_v14, %v93_v13  ;;  %v118_v33 = vld [vmem:[#allocation2 + $0x2d8] sm:$0xff]  ;;  %v121_v34 = vld [vmem:[#allocation2 + $0x2f0] sm:$0xff] }
  0x66   :  { %662 = vmatprep.subr.bf16.mxu0 %v2868_v38  ;;  %v60_v38 = vld [vmem:[#allocation2 + $0x108] sm:$0xff] }
  0x67   :  { %825 = vmatmul.mubr.bf16.gmra.mrb[20].mxu1 %v167_v36  ;;  %v138_v41 = vpack.c.bf16 %v60_v38, %v57_v37  ;;  %v169_v36 = vpack.c.bf16 %v121_v34, %v118_v33  ;;  %v117_v37 = vld [vmem:[#allocation2 + $0x2d0] sm:$0xff]  ;;  %v120_v38 = vld [vmem:[#allocation2 + $0x2e8] sm:$0xff] }
  0x68   :  { %834 = vmatprep.mubr.bf16.mxu1 %v2701_v5 }
  0x69   :  { %663 = vmatpush1.bf16.msra.mxu0 %v2877_v40  ;;  %v67_v40 = vld [vmem:[#allocation2 + $0x140] sm:$0xff] }
  0x6a   :  { %664 = vmatprep.subr.bf16.mxu0 %v2886_v42  ;;  %v119_v42 = vld [vmem:[#allocation2 + $0x2e0] sm:$0xff] }
  0x6b   :  { %v170_v45 = vpack.c.bf16 %v122_v43, %v119_v42  ;;  %v35_v43 = vld [vmem:[#allocation2 + $0x40] sm:$0xff] }
  0x6c   :  { %522 = vmatmul.mubr.bf16.gmra.mrb[12].mxu0 %v132_v23  ;;  %v159_v23 = vpack.c.bf16 %v102_v20, %v99_v19 }
  0x6d   :  { %531 = vmatprep.mubr.bf16.mxu0 %v136_v26  ;;  %665 = vmatpush1.bf16.msra.mxu0 %v2895_v44  ;;  %v142_v44 = vpack.c.bf16 %v67_v40, %v64_v39  ;;  %v108_v26 = vld [vmem:[#allocation2 + $0x288] sm:$0xff]  ;;  %v168_v39 = vpack.c.bf16 %v120_v38, %v117_v37  ;;  %v29_v40 = vld [vmem:[#allocation2 + $0x10] sm:$0xff] }
  0x6e   :  { %666 = vmatprep.subr.bf16.mxu0 %v2904_v46  ;;  %v63_v46 = vld [vmem:[#allocation2 + $0x120] sm:$0xff]  ;;  %v162_v29 = vpack.c.bf16 %v108_v26, %v105_v25 }
  0x6f   :  { %835 = vmatmul.mubr.bf16.gmra.mrb[24].mxu1 %v170_v45  ;;  %v141_v50 = vpack.c.bf16 %v66_v47, %v63_v46  ;;  %v41_v46 = vld [vmem:[#allocation2 + $0x70] sm:$0xff]  ;;  %v44_v47 = vld [vmem:[#allocation2 + $0x88] sm:$0xff] }
  0x71   :  { %667 = vmatpush1.bf16.msra.mxu0 %v2913_v48  ;;  %v70_v48 = vld [vmem:[#allocation2 + $0x158] sm:$0xff] }
  0x72   :  { %v145_v51 = vpack.c.bf16 %v73_v49, %v70_v48  ;;  %v131_v48 = vpack.c.bf16 %v44_v47, %v41_v46  ;;  %v47_v49 = vld [vmem:[#allocation2 + $0xa0] sm:$0xff] }
  0x74   :  { %532 = vmatmul.mubr.bf16.gmra.mrb[16].mxu0 %v135_v32  ;;  %v114_v32 = vld [vmem:[#allocation2 + $0x2b8] sm:$0xff] }
  0x75   :  { %541 = vmatprep.mubr.bf16.mxu0 %v139_v35  ;;  %v165_v35 = vpack.c.bf16 %v114_v32, %v111_v31 }
  0x7c   :  { %542 = vmatmul.mubr.bf16.gmra.mrb[20].mxu0 %v138_v41  ;;  %v32_v41 = vld [vmem:[#allocation2 + $0x28] sm:$0xff] }
  0x7d   :  { %551 = vmatprep.mubr.bf16.mxu0 %v142_v44  ;;  %v125_v42 = vpack.c.bf16 %v32_v41, %v29_v40  ;;  %v38_v44 = vld [vmem:[#allocation2 + $0x58] sm:$0xff] }
  0x7e   :  { %v128_v45 = vpack.c.bf16 %v38_v44, %v35_v43 }
  0x84   :  { %552 = vmatmul.mubr.bf16.gmra.mrb[24].mxu0 %v141_v50  ;;  %v50_v50 = vld [vmem:[#allocation2 + $0xb8] sm:$0xff] }
  0x85   :  { %561 = vmatprep.mubr.bf16.mxu0 %v145_v51  ;;  %v134_v51 = vpack.c.bf16 %v50_v50, %v47_v49 }
  0x8c   :  { %562 = vmatmul.mubr.bf16.gmra.mrb[28].mxu0 %v144_v56  ;;  %v62_v56 = vld [vmem:[#allocation2 + $0x118] sm:$0xff] }
  0x8d   :  { %571 = vmatprep.mubr.bf16.mxu0 %v148_v57  ;;  %v140_v57 = vpack.c.bf16 %v62_v56, %v59_v55 }
  0x94   :  { %572 = vmatmul.mubr.bf16.gmra.mrb[32].mxu0 %v147_v62  ;;  %v74_v62 = vld [vmem:[#allocation2 + $0x178] sm:$0xff] }
  0x95   :  { %581 = vmatprep.mubr.bf16.mxu0 %v151_v63  ;;  %v146_v63 = vpack.c.bf16 %v74_v62, %v71_v61 }
  0x9c   :  { %582 = vmatmul.mubr.bf16.gmra.mrb[36].mxu0 %v150_v4 }
  0x9d   :  { %591 = vmatprep.mubr.bf16.mxu0 %v154_v6 }
  0xa4   :  { %592 = vmatmul.mubr.bf16.gmra.mrb[40].mxu0 %v153_v11 }
  0xa5   :  { %601 = vmatprep.mubr.bf16.mxu0 %v157_v12 }
  0xac   :  { %602 = vmatmul.mubr.bf16.gmra.mrb[44].mxu0 %v156_v17 }
  0xad   :  { %611 = vmatprep.mubr.bf16.mxu0 %v160_v18 }
  0xb4   :  { %612 = vmatmul.mubr.bf16.gmra.mrb[48].mxu0 %v159_v23 }
  0xb5   :  { %621 = vmatprep.mubr.bf16.mxu0 %v163_v24 }
  0xbc   :  { %622 = vmatmul.mubr.bf16.gmra.mrb[52].mxu0 %v162_v29 }
  0xbd   :  { %631 = vmatprep.mubr.bf16.mxu0 %v166_v30 }
  0xc4   :  { %632 = vmatmul.mubr.bf16.gmra.mrb[56].mxu0 %v165_v35 }
  0xc5   :  { %641 = vmatprep.mubr.bf16.mxu0 %v169_v36 }
  0xcc   :  { %642 = vmatmul.mubr.bf16.gmra.mrb[60].mxu0 %v168_v39 }
  0xcd   :  { %684 = vmatprep.mubr.bf16.mxu0 %v2701_v5 }
  0xd4   :  { %685 = vmatmul.mubr.bf16.vlgmr.msra.gmra.mrb[0].mxu0 %v125_v42 }
  0xd5   :  { %694 = vmatprep.mubr.bf16.mxu0 %v2701_v5 }
  0xdc   :  { %695 = vmatmul.mubr.bf16.gmra.mrb[4].mxu0 %v128_v45 }
  0xdd   :  { %704 = vmatprep.mubr.bf16.mxu0 %v2701_v5 }
  0xe4   :  { %705 = vmatmul.mubr.bf16.gmra.mrb[8].mxu0 %v131_v48 }
  0xe5   :  { %714 = vmatprep.mubr.bf16.mxu0 %v2701_v5 }
  0xec   :  { %715 = vmatmul.mubr.bf16.gmra.mrb[12].mxu0 %v134_v51 }
  0xed   :  { %724 = vmatprep.mubr.bf16.mxu0 %v2701_v5 }
  0xf4   :  { %725 = vmatmul.mubr.bf16.gmra.mrb[16].mxu0 %v137_v54 }
  0xf5   :  { %734 = vmatprep.mubr.bf16.mxu0 %v2701_v5 }
  0xfc   :  { %735 = vmatmul.mubr.bf16.gmra.mrb[20].mxu0 %v140_v57 }
  0xfd   :  { %744 = vmatprep.mubr.bf16.mxu0 %v2701_v5 }
 0x104   :  { %745 = vmatmul.mubr.bf16.gmra.mrb[24].mxu0 %v143_v60 }
 0x105   :  { %754 = vmatprep.mubr.bf16.mxu0 %v2701_v5 }
 0x10c   :  { %755 = vmatmul.mubr.bf16.gmra.mrb[28].mxu0 %v146_v63 }
 0x10d   :  { %764 = vmatprep.mubr.bf16.mxu0 %v2701_v5  ;;  %v776_v3 = vpop.f32.mrb[0].mxu1 }
 0x10e   :  { %v778_v4 = vpop.f32.mrb[1].mxu1 }
 0x10f   :  { %v780_v6 = vpop.f32.mrb[2].mxu1 }
 0x110   :  { %v782_v7 = vpop.f32.mrb[3].mxu1 }
 0x114   :  { %765 = vmatmul.mubr.bf16.gmra.mrb[32].mxu0 %v149_v2 }
 0x115   :  { %v786_v8 = vpop.f32.mrb[4].mxu1 }
 0x116   :  { %v788_v9 = vpop.f32.mrb[5].mxu1 }
 0x117   :  { %v790_v10 = vpop.f32.mrb[6].mxu1 }
 0x118   :  { %v792_v11 = vpop.f32.mrb[7].mxu1 }
 0x11d   :  { %v796_v12 = vpop.f32.mrb[8].mxu1 }
 0x11e   :  { %v798_v13 = vpop.f32.mrb[9].mxu1 }
 0x11f   :  { %v800_v14 = vpop.f32.mrb[10].mxu1 }
 0x120   :  { %v802_v15 = vpop.f32.mrb[11].mxu1 }
 0x125   :  { %v806_v16 = vpop.f32.mrb[12].mxu1 }
 0x126   :  { %v808_v17 = vpop.f32.mrb[13].mxu1 }
 0x127   :  { %v810_v18 = vpop.f32.mrb[14].mxu1 }
 0x128   :  { %v812_v5 = vpop.f32.mrb[15].mxu1 }
 0x12f   :  { %v816_v19 = vpop.f32.mrb[16].mxu1 }
 0x130   :  { %v818_v20 = vpop.f32.mrb[17].mxu1 }
 0x131   :  { %v820_v21 = vpop.f32.mrb[18].mxu1 }
 0x132   :  { %v822_v22 = vpop.f32.mrb[19].mxu1 }
 0x13a   :  { %v826_v23 = vpop.f32.mrb[20].mxu1 }
 0x13b   :  { %v828_v24 = vpop.f32.mrb[21].mxu1 }
 0x13c   :  { %v830_v25 = vpop.f32.mrb[22].mxu1 }
 0x13d   :  { %v832_v26 = vpop.f32.mrb[23].mxu1 }
 0x142   :  { %v2957_v27 = vpop.f32.mrb[24].mxu1 }
 0x143   :  { %v2959_v28 = vpop.f32.mrb[25].mxu1 }
 0x144   :  { %v2961_v29 = vpop.f32.mrb[26].mxu1 }
 0x145   :  { %v2963_v30 = vpop.f32.mrb[27].mxu1 }
 0x16f   :  { %v583_v31 = vpop.f32.mrb[36].mxu0 }
 0x170   :  { %v777_v32 = vadd.f32 %v776_v3, %v583_v31  ;;  %v585_v33 = vpop.f32.mrb[37].mxu0 }
 0x171   :  { %v779_v34 = vadd.f32 %v778_v4, %v585_v33  ;;  %v587_v35 = vpop.f32.mrb[38].mxu0 }
 0x172   :  { %v781_v36 = vadd.f32 %v780_v6, %v587_v35  ;;  %v589_v37 = vpop.f32.mrb[39].mxu0 }
 0x173   :  { %v783_v38 = vadd.f32 %v782_v7, %v589_v37 }
 0x174   :  { %v2965_v39 = vpack.c.bf16 %v781_v36, %v777_v32 }
 0x175   :  { %v2967_v40 = vpack.c.bf16 %v783_v38, %v779_v34 }
 0x177   :  { %v593_v41 = vpop.f32.mrb[40].mxu0 }
 0x178   :  { %v787_v42 = vadd.f32 %v786_v8, %v593_v41  ;;  %v595_v43 = vpop.f32.mrb[41].mxu0 }
 0x179   :  { %v789_v44 = vadd.f32 %v788_v9, %v595_v43  ;;  %v597_v45 = vpop.f32.mrb[42].mxu0 }
 0x17a   :  { %v791_v46 = vadd.f32 %v790_v10, %v597_v45  ;;  %v599_v47 = vpop.f32.mrb[43].mxu0 }
 0x17b   :  { %v793_v48 = vadd.f32 %v792_v11, %v599_v47 }
 0x17c   :  { %v2969_v49 = vpack.c.bf16 %v791_v46, %v787_v42 }
 0x17d   :  { %v2971_v50 = vpack.c.bf16 %v793_v48, %v789_v44 }
 0x17f   :  { %v603_v51 = vpop.f32.mrb[44].mxu0 }
 0x180   :  { %v797_v52 = vadd.f32 %v796_v12, %v603_v51  ;;  %v605_v53 = vpop.f32.mrb[45].mxu0 }
 0x181   :  { %v799_v54 = vadd.f32 %v798_v13, %v605_v53  ;;  %v607_v55 = vpop.f32.mrb[46].mxu0 }
 0x182   :  { %v801_v56 = vadd.f32 %v800_v14, %v607_v55  ;;  %v609_v57 = vpop.f32.mrb[47].mxu0 }
 0x183   :  { %v803_v58 = vadd.f32 %v802_v15, %v609_v57 }
 0x184   :  { %v2973_v59 = vpack.c.bf16 %v801_v56, %v797_v52 }
 0x185   :  { %v2975_v60 = vpack.c.bf16 %v803_v58, %v799_v54 }
 0x187   :  { %v613_v61 = vpop.f32.mrb[48].mxu0 }
 0x188   :  { %v807_v62 = vadd.f32 %v806_v16, %v613_v61  ;;  %v615_v63 = vpop.f32.mrb[49].mxu0 }
 0x189   :  { %v809_v0 = vadd.f32 %v808_v17, %v615_v63  ;;  %v617_v1 = vpop.f32.mrb[50].mxu0 }
 0x18a   :  { %v811_v2 = vadd.f32 %v810_v18, %v617_v1  ;;  %v619_v3 = vpop.f32.mrb[51].mxu0 }
 0x18b   :  { %v813_v4 = vadd.f32 %v812_v5, %v619_v3 }
 0x18c   :  { %v2977_v6 = vpack.c.bf16 %v811_v2, %v807_v62 }
 0x18d   :  { %v2979_v7 = vpack.c.bf16 %v813_v4, %v809_v0 }
 0x18f   :  { %v623_v8 = vpop.f32.mrb[52].mxu0 }
 0x190   :  { %v817_v9 = vadd.f32 %v816_v19, %v623_v8  ;;  %v625_v10 = vpop.f32.mrb[53].mxu0 }
 0x191   :  { %v819_v11 = vadd.f32 %v818_v20, %v625_v10  ;;  %v627_v12 = vpop.f32.mrb[54].mxu0 }
 0x192   :  { %v821_v13 = vadd.f32 %v820_v21, %v627_v12  ;;  %v629_v14 = vpop.f32.mrb[55].mxu0 }
 0x193   :  { %v823_v15 = vadd.f32 %v822_v22, %v629_v14 }
 0x194   :  { %v2981_v31 = vpack.c.bf16 %v821_v13, %v817_v9 }
 0x195   :  { %v2983_v16 = vpack.c.bf16 %v823_v15, %v819_v11 }
 0x197   :  { %v633_v17 = vpop.f32.mrb[56].mxu0 }
 0x198   :  { %v827_v18 = vadd.f32 %v826_v23, %v633_v17  ;;  %v635_v32 = vpop.f32.mrb[57].mxu0 }
 0x199   :  { %v829_v5 = vadd.f32 %v828_v24, %v635_v32  ;;  %v637_v33 = vpop.f32.mrb[58].mxu0 }
 0x19a   :  { %v831_v34 = vadd.f32 %v830_v25, %v637_v33  ;;  %v639_v35 = vpop.f32.mrb[59].mxu0 }
 0x19b   :  { %v833_v36 = vadd.f32 %v832_v26, %v639_v35 }
 0x19c   :  { %v2985_v37 = vpack.c.bf16 %v831_v34, %v827_v18 }
 0x19d   :  { %v2987_v19 = vpack.c.bf16 %v833_v36, %v829_v5 }
 0x19f   :  { %v643_v20 = vpop.f32.mrb[60].mxu0 }
 0x1a0   :  { %v837_v21 = vadd.f32 %v2957_v27, %v643_v20  ;;  %v645_v22 = vpop.f32.mrb[61].mxu0 }
 0x1a1   :  { %v839_v38 = vadd.f32 %v2959_v28, %v645_v22  ;;  %v647_v41 = vpop.f32.mrb[62].mxu0 }
 0x1a2   :  { %v841_v42 = vadd.f32 %v2961_v29, %v647_v41  ;;  %v649_v23 = vpop.f32.mrb[63].mxu0 }
 0x1a3   :  { %v843_v24 = vadd.f32 %v2963_v30, %v649_v23 }
 0x1a4   :  { %v2993_v43 = vpack.c.bf16 %v841_v42, %v837_v21 }
 0x1a5   :  { %v2995_v25 = vpack.c.bf16 %v843_v24, %v839_v38 }
 0x1a7   :  { %v686_v26 = vpop.f32.mrb[0].mxu0 }
 0x1a8   :  { %v688_v44 = vpop.f32.mrb[1].mxu0 }
 0x1a9   :  { %v690_v45 = vpop.f32.mrb[2].mxu0 }
 0x1aa   :  { %v845_v46 = vpack.c.bf16 %v690_v45, %v686_v26  ;;  %v692_v47 = vpop.f32.mrb[3].mxu0 }
 0x1ab   :  { %v2997_v27 = vpack.c.bf16 %v692_v47, %v688_v44 }
 0x1ac   :  { %881 = vrot.lane.b32.xlu0 %v845_v46, %s2702_s1  ;;  %2226 = vmatprep.mubr.msk.bf16.mxu1 %vm889_vm0, %v845_v46 }
 0x1af   :  { %v696_v28 = vpop.f32.mrb[4].mxu0 }
 0x1b0   :  { %v698_v29 = vpop.f32.mrb[5].mxu0 }
 0x1b1   :  { %v700_v30 = vpop.f32.mrb[6].mxu0 }
 0x1b2   :  { %v3001_v48 = vpack.c.bf16 %v700_v30, %v696_v28  ;;  %v702_v51 = vpop.f32.mrb[7].mxu0 }
 0x1b3   :  { %v3003_v52 = vpack.c.bf16 %v702_v51, %v698_v29 }
 0x1b4   :  { %883 = vrot.lane.b32.xlu0 %v3001_v48, %s2702_s1 }
 0x1b7   :  { %v706_v53 = vpop.f32.mrb[8].mxu0 }
 0x1b8   :  { %v708_v54 = vpop.f32.mrb[9].mxu0 }
 0x1b9   :  { %v710_v55 = vpop.f32.mrb[10].mxu0 }
 0x1ba   :  { %v3007_v56 = vpack.c.bf16 %v710_v55, %v706_v53  ;;  %v712_v57 = vpop.f32.mrb[11].mxu0 }
 0x1bb   :  { %v3009_v58 = vpack.c.bf16 %v712_v57, %v708_v54 }
 0x1bc   :  { %885 = vrot.lane.b32.xlu1 %v3007_v56, %s2702_s1 }
 0x1bf   :  { %v716_v61 = vpop.f32.mrb[12].mxu0 }
 0x1c0   :  { %v718_v62 = vpop.f32.mrb[13].mxu0 }
 0x1c1   :  { %v720_v63 = vpop.f32.mrb[14].mxu0 }
 0x1c2   :  { %v3013_v0 = vpack.c.bf16 %v720_v63, %v716_v61  ;;  %v722_v1 = vpop.f32.mrb[15].mxu0 }
 0x1c3   :  { %v3015_v2 = vpack.c.bf16 %v722_v1, %v718_v62 }
 0x1c4   :  { %887 = vrot.lane.b32.xlu1 %v3013_v0, %s2702_s1 }
 0x1c7   :  { %v726_v3 = vpop.f32.mrb[16].mxu0 }
 0x1c8   :  { %v728_v4 = vpop.f32.mrb[17].mxu0 }
 0x1c9   :  { %v730_v8 = vpop.f32.mrb[18].mxu0 }
 0x1ca   :  { %v3019_v9 = vpack.c.bf16 %v730_v8, %v726_v3  ;;  %v732_v10 = vpop.f32.mrb[19].mxu0 }
 0x1cb   :  { %v3021_v11 = vpack.c.bf16 %v732_v10, %v728_v4 }
 0x1cc   :  { %983 = vrot.lane.b32.xlu0 %v3019_v9, %s2702_s1 }
 0x1cf   :  { %v736_v12 = vpop.f32.mrb[20].mxu0 }
 0x1d0   :  { %v738_v13 = vpop.f32.mrb[21].mxu0 }
 0x1d1   :  { %v740_v14 = vpop.f32.mrb[22].mxu0 }
 0x1d2   :  { %v3025_v15 = vpack.c.bf16 %v740_v14, %v736_v12  ;;  %v742_v17 = vpop.f32.mrb[23].mxu0 }
 0x1d3   :  { %v3027_v18 = vpack.c.bf16 %v742_v17, %v738_v13 }
 0x1d4   :  { %985 = vrot.lane.b32.xlu1 %v3025_v15, %s2702_s1 }
 0x1d7   :  { %v746_v32 = vpop.f32.mrb[24].mxu0 }
 0x1d8   :  { %v748_v5 = vpop.f32.mrb[25].mxu0 }
 0x1d9   :  { %v750_v33 = vpop.f32.mrb[26].mxu0 }
 0x1da   :  { %v3031_v34 = vpack.c.bf16 %v750_v33, %v746_v32  ;;  %v752_v35 = vpop.f32.mrb[27].mxu0 }
 0x1db   :  { %v3033_v36 = vpack.c.bf16 %v752_v35, %v748_v5 }
 0x1dc   :  { %987 = vrot.lane.b32.xlu0 %v3031_v34, %s2702_s1 }
 0x1df   :  { %v756_v20 = vpop.f32.mrb[28].mxu0 }
 0x1e0   :  { %v758_v21 = vpop.f32.mrb[29].mxu0 }
 0x1e1   :  { %v760_v22 = vpop.f32.mrb[30].mxu0 }
 0x1e2   :  { %v3037_v38 = vpack.c.bf16 %v760_v22, %v756_v20  ;;  %v762_v41 = vpop.f32.mrb[31].mxu0 }
 0x1e3   :  { %v3039_v42 = vpack.c.bf16 %v762_v41, %v758_v21 }
 0x1e4   :  { %989 = vrot.lane.b32.xlu1 %v3037_v38, %s2702_s1 }
 0x1e7   :  { %v766_v23 = vpop.f32.mrb[32].mxu0 }
 0x1e8   :  { %1086 = vrot.lane.b32.xlu1 %v2965_v39, %s2702_s1  ;;  %v768_v24 = vpop.f32.mrb[33].mxu0 }
 0x1e9   :  { %v770_v26 = vpop.f32.mrb[34].mxu0 }
 0x1ea   :  { %v853_v44 = vpack.c.bf16 %v770_v26, %v766_v23  ;;  %v772_v45 = vpop.f32.mrb[35].mxu0 }
 0x1eb   :  { %v3045_v46 = vpack.c.bf16 %v772_v45, %v768_v24 }
 0x1ec   :  { %1090 = vrot.lane.b32.xlu1 %v2973_v59, %s2702_s1  ;;  %1084 = vrot.lane.b32.xlu0 %v853_v44, %s2702_s1 }
 0x1f0   :  { %1187 = vrot.lane.b32.xlu1 %v2981_v31, %s2702_s1  ;;  %1088 = vrot.lane.b32.xlu0 %v2969_v49, %s2702_s1 }
 0x1f4   :  { %1191 = vrot.lane.b32.xlu1 %v2993_v43, %s2702_s1  ;;  %1185 = vrot.lane.b32.xlu0 %v2977_v6, %s2702_s1 }
 0x1f8   :  { %1189 = vrot.lane.b32.xlu0 %v2985_v37, %s2702_s1 }
 0x21e   :  { %v882_v47 = vpop.permute.xlu0 %881 }
 0x21f   :  { %v903_v28 = vsel %vm889_vm0, %v882_v47, 0  ;;  %2426 = vmatprep.subr.msk.bf16.mxu1 %vm889_vm0, %v882_v47 }
 0x220   :  { %2219 = vmatpush3.bf16.xpose.msra.mxu1 %v903_v28 }
 0x226   :  { %v884_v29 = vpop.permute.xlu0 %883 }
 0x227   :  { %v906_v30 = vsel %vm889_vm0, %v884_v29, 0  ;;  %2427 = vmatprep.subr.msk.bf16.mxu1 %vm889_vm0, %v884_v29 }
 0x228   :  { %2221 = vmatpush3.bf16.xpose.msra.mxu1 %v906_v30 }
 0x22e   :  { %v886_v51 = vpop.permute.xlu1 %885 }
 0x22f   :  { %v909_v53 = vsel %vm889_vm0, %v886_v51, 0  ;;  %2428 = vmatprep.subr.msk.bf16.mxu1 %vm889_vm0, %v886_v51 }
 0x230   :  { %2223 = vmatpush3.bf16.xpose.msra.mxu1 %v909_v53 }
 0x236   :  { %v888_v54 = vpop.permute.xlu1 %887 }
 0x237   :  { %v912_v55 = vsel %vm889_vm0, %v888_v54, 0  ;;  %2429 = vmatprep.subr.msk.bf16.mxu1 %vm889_vm0, %v888_v54 }
 0x238   :  { %2225 = vmatpush3.bf16.xpose.msra.mxu1 %v912_v55 }
 0x23e   :  { %v984_v57 = vpop.permute.xlu0 %983 }
 0x23f   :  { %v1004_v61 = vsel %vm889_vm0, %v984_v57, 0  ;;  %2227 = vmatmul.mubr.msk.bf16.vlgmr.msra.gmra.mrb[28].mxu1 %vm889_vm0, %v3001_v48  ;;  %2430 = vmatprep.subr.msk.bf16.mxu1 %vm889_vm0, %v984_v57 }
 0x240   :  { %2230 = vmatprep.mubr.msk.bf16.mxu1 %vm889_vm0, %v3007_v56  ;;  %2235 = vmatpush3.bf16.xpose.msra.mxu1 %v1004_v61 }
 0x246   :  { %v986_v62 = vpop.permute.xlu1 %985 }
 0x247   :  { %v1007_v63 = vsel %vm889_vm0, %v986_v62, 0  ;;  %2231 = vmatmul.mubr.msk.bf16.gmra.mrb[32].mxu1 %vm889_vm0, %v3013_v0  ;;  %2431 = vmatprep.subr.msk.bf16.mxu1 %vm889_vm0, %v986_v62 }
 0x248   :  { %2237 = vmatpush3.bf16.xpose.msra.mxu1 %v1007_v63  ;;  %2242 = vmatprep.mubr.msk.bf16.mxu1 %vm889_vm0, %v3019_v9 }
 0x24e   :  { %v988_v1 = vpop.permute.xlu0 %987 }
 0x24f   :  { %v1010_v48 = vsel %vm889_vm0, %v988_v1, 0  ;;  %2432 = vmatprep.subr.msk.bf16.mxu1 %vm889_vm0, %v988_v1 }
 0x250   :  { %2239 = vmatpush3.bf16.xpose.msra.mxu1 %v1010_v48 }
 0x256   :  { %v990_v56 = vpop.permute.xlu1 %989 }
 0x257   :  { %v1013_v3 = vsel %vm889_vm0, %v990_v56, 0  ;;  %2433 = vmatprep.subr.msk.bf16.mxu1 %vm889_vm0, %v990_v56 }
 0x258   :  { %2241 = vmatpush3.bf16.xpose.msra.mxu1 %v1013_v3 }
 0x25a   :  { %v1087_v8 = vpop.permute.xlu1 %1086 }
 0x25b   :  { %v1108_v9 = vsel %vm889_vm0, %v1087_v8, 0 }
 0x25e   :  { %v1085_v4 = vpop.permute.xlu0 %1084  ;;  %v1091_v13 = vpop.permute.xlu1 %1090 }
 0x25f   :  { %v1105_v0 = vsel %vm889_vm0, %v1085_v4, 0  ;;  %2243 = vmatmul.mubr.msk.bf16.vlgmr.msra.gmra.mrb[36].mxu1 %vm889_vm0, %v3025_v15  ;;  %2434 = vmatprep.subr.msk.bf16.mxu1 %vm889_vm0, %v1085_v4  ;;  %v1114_v14 = vsel %vm889_vm0, %v1091_v13, 0 }
 0x260   :  { %2246 = vmatprep.mubr.msk.bf16.mxu1 %vm889_vm0, %v3031_v34  ;;  %2251 = vmatpush3.bf16.xpose.msra.mxu1 %v1105_v0 }
 0x261   :  { %2435 = vmatprep.subr.msk.bf16.mxu1 %vm889_vm0, %v1087_v8 }
 0x262   :  { %v1089_v10 = vpop.permute.xlu0 %1088  ;;  %v1188_v32 = vpop.permute.xlu1 %1187 }
 0x263   :  { %v1111_v12 = vsel %vm889_vm0, %v1089_v10, 0  ;;  %v1209_v5 = vsel %vm889_vm0, %v1188_v32, 0 }
 0x266   :  { %v1186_v15 = vpop.permute.xlu0 %1185  ;;  %v1192_v34 = vpop.permute.xlu1 %1191 }
 0x267   :  { %2247 = vmatmul.mubr.msk.bf16.gmra.mrb[40].mxu1 %vm889_vm0, %v3037_v38  ;;  %v1206_v17 = vsel %vm889_vm0, %v1186_v15, 0 }
 0x268   :  { %2253 = vmatpush3.bf16.xpose.msra.mxu1 %v1108_v9  ;;  %2258 = vmatprep.mubr.msk.bf16.mxu1 %vm889_vm0, %v853_v44 }
 0x269   :  { %2436 = vmatprep.subr.msk.bf16.mxu1 %vm889_vm0, %v1089_v10 }
 0x26a   :  { %v1190_v33 = vpop.permute.xlu0 %1189 }
 0x270   :  { %2255 = vmatpush3.bf16.xpose.msra.mxu1 %v1111_v12 }
 0x271   :  { %2437 = vmatprep.subr.msk.bf16.mxu1 %vm889_vm0, %v1091_v13 }
 0x278   :  { %2257 = vmatpush3.bf16.xpose.msra.mxu1 %v1114_v14 }
 0x279   :  { %2438 = vmatprep.subr.msk.bf16.mxu1 %vm889_vm0, %v1186_v15 }
 0x27f   :  { %2259 = vmatmul.mubr.msk.bf16.vlgmr.msra.gmra.mrb[44].mxu1 %vm889_vm0, %v2965_v39  ;;  %v1212_v39 = vsel %vm889_vm0, %v1190_v33, 0 }
 0x280   :  { %2262 = vmatprep.mubr.msk.bf16.mxu1 %vm889_vm0, %v2969_v49  ;;  %2267 = vmatpush3.bf16.xpose.msra.mxu1 %v1206_v17  ;;  %v1215_v49 = vsel %vm889_vm0, %v1192_v34, 0 }
 0x281   :  { %2439 = vmatprep.subr.msk.bf16.mxu1 %vm889_vm0, %v1188_v32 }
 0x287   :  { %2263 = vmatmul.mubr.msk.bf16.gmra.mrb[48].mxu1 %vm889_vm0, %v2973_v59  ;;  %v1282_v59 = vlaneseq }
 0x288   :  { %2269 = vmatpush3.bf16.xpose.msra.mxu1 %v1209_v5  ;;  %2274 = vmatprep.mubr.msk.bf16.mxu1 %vm889_vm0, %v2977_v6 }
 0x289   :  { %2440 = vmatprep.subr.msk.bf16.mxu1 %vm889_vm0, %v1190_v33  ;;  %v3130_v6 = vshrl.u32 %v1282_v59, 7 }
 0x28b   :  { %v3157_v22 = vadd.s32 32, %v3130_v6  ;;  %v3174_v24 = vadd.s32 48, %v3130_v6  ;;  %v3177_v26 = vadd.s32 40, %v3130_v6  ;;  %v3191_v29 = vadd.s32 56, %v3130_v6 }
 0x290   :  { %2271 = vmatpush3.bf16.xpose.msra.mxu1 %v1212_v39 }
 0x291   :  { %2441 = vmatprep.subr.msk.bf16.mxu1 %vm889_vm0, %v1192_v34 }
 0x298   :  { %2273 = vmatpush3.bf16.xpose.msra.mxu1 %v1215_v49 }
 0x299   :  { %2282 = vmatprep.subr.bf16.mxu1 %v2997_v27 }
 0x29f   :  { %2275 = vmatmul.mubr.msk.bf16.vlgmr.msra.gmra.mrb[52].mxu1 %vm889_vm0, %v2981_v31  ;;  %v3132_v31 = vand.u32 127, %v1282_v59 }
 0x2a0   :  { %2278 = vmatprep.mubr.msk.bf16.mxu1 %vm889_vm0, %v2985_v37  ;;  %2283 = vmatpush3.bf16.msra.mxu1 %v2997_v27  ;;  %v3135_v37 = vadd.s32 16, %v3130_v6  ;;  %v3138_v27 = vadd.s32 8, %v3130_v6 }
 0x2a1   :  { %2284 = vmatprep.subr.bf16.mxu1 %v3003_v52  ;;  %vm1293_vm1 = vcmp.ge.s32.totalorder %v3130_v6, %v3132_v31  ;;  %vm1297_vm5 = vcmp.ge.s32.totalorder %v3157_v22, %v3132_v31  ;;  %vm1299_vm6 = vcmp.ge.s32.totalorder %v3174_v24, %v3132_v31  ;;  %vm1298_vm7 = vcmp.ge.s32.totalorder %v3177_v26, %v3132_v31 }
 0x2a2   :  { %vm1295_vm2 = vcmp.ge.s32.totalorder %v3135_v37, %v3132_v31  ;;  %vm1294_vm3 = vcmp.ge.s32.totalorder %v3138_v27, %v3132_v31  ;;  %vm1300_vm8 = vcmp.ge.s32.totalorder %v3191_v29, %v3132_v31 }
 0x2a4   :  { %2285 = vmatpush3.bf16.msra.mxu1 %v3003_v52 }
 0x2a5   :  { %2286 = vmatprep.subr.bf16.mxu1 %v3009_v58 }
 0x2a7   :  { %2279 = vmatmul.mubr.msk.bf16.gmra.mrb[56].mxu1 %vm889_vm0, %v2993_v43 }
 0x2a8   :  { %2287 = vmatpush3.bf16.msra.mxu1 %v3009_v58  ;;  %v3145_v58 = vadd.s32 24, %v3130_v6 }
 0x2a9   :  { %2288 = vmatprep.subr.bf16.mxu1 %v3015_v2 }
 0x2aa   :  { %vm1296_vm4 = vcmp.ge.s32.totalorder %v3145_v58, %v3132_v31 }
 0x2ac   :  { %2289 = vmatpush3.bf16.msra.mxu1 %v3015_v2 }
 0x2ad   :  { %2298 = vmatprep.subr.bf16.mxu1 %v3021_v11 }
 0x312   :  { %v2228_v43 = vpop.f32.mrb[28].mxu1 }
 0x313   :  { %v948_v52 = vpop.f32.mrb[29].mxu1  ;;  %v3162_v38 = vsel %vm1295_vm2, %v2228_v43, -1e+30 }
 0x314   :  { %v3152_v2 = vsel %vm1293_vm1, %v948_v52, -1e+30  ;;  %v2229_v35 = vpop.f32.mrb[30].mxu1  ;;  %v1355_v44 = vsel %vm889_vm0, %v3162_v38, -inf }
 0x315   :  { %v951_v20 = vpop.f32.mrb[31].mxu1  ;;  %v1349_v21 = vsel %vm889_vm0, %v3152_v2, -inf  ;;  %v3186_v45 = vsel %vm1296_vm4, %v2229_v35, -1e+30 }
 0x316   :  { %v3167_v41 = vsel %vm1294_vm3, %v951_v20, -1e+30  ;;  %1350 = vmax.xlane.f32.xlu0 %v1349_v21  ;;  %v1358_v55 = vsel %vm889_vm0, %v3186_v45, -inf }
 0x317   :  { %v1352_v23 = vsel %vm889_vm0, %v3167_v41, -inf }
 0x318   :  { %1353 = vmax.xlane.f32.xlu1 %v1352_v23 }
 0x31a   :  { %v2232_v47 = vpop.f32.mrb[32].mxu1  ;;  %1356 = vmax.xlane.f32.xlu0 %v1355_v44 }
 0x31b   :  { %v964_v28 = vpop.f32.mrb[33].mxu1  ;;  %v3207_v57 = vsel %vm1299_vm6, %v2232_v47, -1e+30 }
 0x31c   :  { %v3198_v30 = vsel %vm1297_vm5, %v964_v28, -1e+30  ;;  %v2233_v51 = vpop.f32.mrb[34].mxu1  ;;  %v1367_v62 = vsel %vm889_vm0, %v3207_v57, -inf }
 0x31d   :  { %v967_v53 = vpop.f32.mrb[35].mxu1  ;;  %v1361_v54 = vsel %vm889_vm0, %v3198_v30, -inf  ;;  %v3223_v1 = vsel %vm1300_vm8, %v2233_v51, -1e+30 }
 0x31e   :  { %v3212_v61 = vsel %vm1298_vm7, %v967_v53, -1e+30  ;;  %1362 = vmax.xlane.f32.xlu1 %v1361_v54  ;;  %1359 = vmax.xlane.f32.xlu0 %v1358_v55  ;;  %v1370_v48 = vsel %vm889_vm0, %v3223_v1, -inf }
 0x31f   :  { %v1364_v63 = vsel %vm889_vm0, %v3212_v61, -inf }
 0x322   :  { %1368 = vmax.xlane.f32.xlu1 %v1367_v62  ;;  %1365 = vmax.xlane.f32.xlu0 %v1364_v63 }
 0x326   :  { %1371 = vmax.xlane.f32.xlu0 %v1370_v48 }
 0x332   :  { %v2244_v56 = vpop.f32.mrb[36].mxu1 }
 0x333   :  { %v1049_v3 = vpop.f32.mrb[37].mxu1  ;;  %v3237_v10 = vsel %vm1295_vm2, %v2244_v56, -1e+30 }
 0x334   :  { %v3230_v4 = vsel %vm1293_vm1, %v1049_v3, -1e+30  ;;  %v2245_v0 = vpop.f32.mrb[38].mxu1  ;;  %v1379_v15 = vsel %vm889_vm0, %v3237_v10, -inf }
 0x335   :  { %v1052_v8 = vpop.f32.mrb[39].mxu1  ;;  %v1373_v9 = vsel %vm889_vm0, %v3230_v4, -inf  ;;  %v3249_v14 = vsel %vm1296_vm4, %v2245_v0, -1e+30 }
 0x336   :  { %v3242_v12 = vsel %vm1294_vm3, %v1052_v8, -1e+30  ;;  %1374 = vmax.xlane.f32.xlu1 %v1373_v9  ;;  %v1382_v5 = vsel %vm889_vm0, %v3249_v14, -inf }
 0x337   :  { %v1376_v13 = vsel %vm889_vm0, %v3242_v12, -inf }
 0x338   :  { %1377 = vmax.xlane.f32.xlu0 %v1376_v13 }
 0x33a   :  { %1380 = vmax.xlane.f32.xlu1 %v1379_v15  ;;  %v2248_v17 = vpop.f32.mrb[40].mxu1 }
 0x33b   :  { %v1065_v32 = vpop.f32.mrb[41].mxu1  ;;  %v3265_v59 = vsel %vm1299_vm6, %v2248_v17, -1e+30 }
 0x33c   :  { %v3258_v33 = vsel %vm1297_vm5, %v1065_v32, -1e+30  ;;  %v2249_v39 = vpop.f32.mrb[42].mxu1  ;;  %1383 = vmax.xlane.f32.xlu0 %v1382_v5  ;;  %v1391_v20 = vsel %vm889_vm0, %v3265_v59, -inf }
 0x33d   :  { %v1068_v34 = vpop.f32.mrb[43].mxu1  ;;  %v1385_v49 = vsel %vm889_vm0, %v3258_v33, -inf  ;;  %v3277_v35 = vsel %vm1300_vm8, %v2249_v39, -1e+30 }
 0x33e   :  { %v3270_v43 = vsel %vm1298_vm7, %v1068_v34, -1e+30  ;;  %1386 = vmax.xlane.f32.xlu1 %v1385_v49  ;;  %v1394_v21 = vsel %vm889_vm0, %v3277_v35, -inf }
 0x33f   :  { %v1388_v52 = vsel %vm889_vm0, %v3270_v43, -inf }
 0x340   :  { %1389 = vmax.xlane.f32.xlu0 %v1388_v52 }
 0x342   :  { %1392 = vmax.xlane.f32.xlu1 %v1391_v20 }
 0x344   :  { %1395 = vmax.xlane.f32.xlu0 %v1394_v21 }
 0x352   :  { %v2260_v23 = vpop.f32.mrb[44].mxu1 }
 0x353   :  { %v1150_v44 = vpop.f32.mrb[45].mxu1  ;;  %v3293_v54 = vsel %vm1295_vm2, %v2260_v23, -1e+30 }
 0x354   :  { %v3286_v47 = vsel %vm1293_vm1, %v1150_v44, -1e+30  ;;  %v2261_v28 = vpop.f32.mrb[46].mxu1  ;;  %v1403_v48 = vsel %vm889_vm0, %v3293_v54, -inf }
 0x355   :  { %v1153_v51 = vpop.f32.mrb[47].mxu1  ;;  %v1397_v53 = vsel %vm889_vm0, %v3286_v47, -inf  ;;  %v3305_v63 = vsel %vm1296_vm4, %v2261_v28, -1e+30 }
 0x356   :  { %v3298_v55 = vsel %vm1294_vm3, %v1153_v51, -1e+30  ;;  %1398 = vmax.xlane.f32.xlu1 %v1397_v53  ;;  %v1406_v0 = vsel %vm889_vm0, %v3305_v63, -inf }
 0x357   :  { %v1400_v62 = vsel %vm889_vm0, %v3298_v55, -inf }
 0x358   :  { %1401 = vmax.xlane.f32.xlu0 %v1400_v62 }
 0x35a   :  { %1404 = vmax.xlane.f32.xlu1 %v1403_v48  ;;  %v2264_v56 = vpop.f32.mrb[48].mxu1 }
 0x35b   :  { %v1166_v3 = vpop.f32.mrb[49].mxu1  ;;  %v3321_v17 = vsel %vm1299_vm6, %v2264_v56, -1e+30 }
 0x35c   :  { %v3314_v8 = vsel %vm1297_vm5, %v1166_v3, -1e+30  ;;  %1407 = vmax.xlane.f32.xlu0 %v1406_v0  ;;  %v2265_v9 = vpop.f32.mrb[50].mxu1  ;;  %v1415_v34 = vsel %vm889_vm0, %v3321_v17, -inf }
 0x35d   :  { %v1169_v13 = vpop.f32.mrb[51].mxu1  ;;  %v1409_v15 = vsel %vm889_vm0, %v3314_v8, -inf  ;;  %v3333_v39 = vsel %vm1300_vm8, %v2265_v9, -1e+30 }
 0x35e   :  { %v3326_v32 = vsel %vm1298_vm7, %v1169_v13, -1e+30  ;;  %1410 = vmax.xlane.f32.xlu1 %v1409_v15  ;;  %v1418_v49 = vsel %vm889_vm0, %v3333_v39, -inf }
 0x35f   :  { %v1412_v5 = vsel %vm889_vm0, %v3326_v32, -inf }
 0x360   :  { %1413 = vmax.xlane.f32.xlu0 %v1412_v5 }
 0x362   :  { %1416 = vmax.xlane.f32.xlu1 %v1415_v34 }
 0x364   :  { %1419 = vmax.xlane.f32.xlu0 %v1418_v49 }
 0x372   :  { %v2276_v52 = vpop.f32.mrb[52].mxu1 }
 0x373   :  { %v1251_v20 = vpop.f32.mrb[53].mxu1  ;;  %v3349_v51 = vsel %vm1295_vm2, %v2276_v52, -1e+30 }
 0x374   :  { %v3342_v21 = vsel %vm1293_vm1, %v1251_v20, -1e+30  ;;  %v2277_v23 = vpop.f32.mrb[54].mxu1  ;;  %v1427_v37 = vsel %vm889_vm0, %v3349_v51, -inf }
 0x375   :  { %v1254_v44 = vpop.f32.mrb[55].mxu1  ;;  %v1421_v28 = vsel %vm889_vm0, %v3342_v21, -inf  ;;  %v3361_v62 = vsel %vm1296_vm4, %v2277_v23, -1e+30 }
 0x376   :  { %v3354_v53 = vsel %vm1294_vm3, %v1254_v44, -1e+30  ;;  %1422 = vmax.xlane.f32.xlu1 %v1421_v28  ;;  %v1430_v27 = vsel %vm889_vm0, %v3361_v62, -inf }
 0x377   :  { %v1424_v6 = vsel %vm889_vm0, %v3354_v53, -inf }
 0x378   :  { %1425 = vmax.xlane.f32.xlu0 %v1424_v6 }
 0x37a   :  { %1428 = vmax.xlane.f32.xlu1 %v1427_v37  ;;  %v2280_v48 = vpop.f32.mrb[56].mxu1 }
 0x37b   :  { %v1267_v56 = vpop.f32.mrb[57].mxu1  ;;  %v3377_v13 = vsel %vm1299_vm6, %v2280_v48, -1e+30 }
 0x37c   :  { %v3370_v3 = vsel %vm1297_vm5, %v1267_v56, -1e+30  ;;  %1431 = vmax.xlane.f32.xlu0 %v1430_v27  ;;  %v2281_v0 = vpop.f32.mrb[58].mxu1  ;;  %v1439_v24 = vsel %vm889_vm0, %v3377_v13, -inf }
 0x37d   :  { %v1270_v58 = vpop.f32.mrb[59].mxu1  ;;  %v1433_v9 = vsel %vm889_vm0, %v3370_v3, -inf  ;;  %v3389_v5 = vsel %vm1300_vm8, %v2281_v0, -1e+30 }
 0x37e   :  { %v3382_v15 = vsel %vm1298_vm7, %v1270_v58, -1e+30  ;;  %1434 = vmax.xlane.f32.xlu1 %v1433_v9  ;;  %v1442_v34 = vsel %vm889_vm0, %v3389_v5, -inf }
 0x37f   :  { %v1436_v22 = vsel %vm889_vm0, %v3382_v15, -inf }
 0x380   :  { %1437 = vmax.xlane.f32.xlu0 %v1436_v22 }
 0x382   :  { %1440 = vmax.xlane.f32.xlu1 %v1439_v24 }
 0x384   :  { %1443 = vmax.xlane.f32.xlu0 %v1442_v34 }
 0x3a3   :  { %v1351_v26 = vpop.xlane.xlu0 %1350 }
 0x3a4   :  { %v1445_v49 = vsub.f32 %v3152_v2, %v1351_v26 }
 0x3a5   :  { %v1354_v52 = vpop.xlane.xlu1 %1353 }
 0x3a6   :  { %v1477_v20 = vmul.f32 1.442695, %v1445_v49  ;;  %v1446_v23 = vsub.f32 %v3167_v41, %v1354_v52 }
 0x3a7   :  { %v1357_v44 = vpop.xlane.xlu0 %1356 }
 0x3a8   :  { %v1479_v31 = vmul.f32 1.442695, %v1446_v23  ;;  %v1447_v29 = vsub.f32 %v3162_v38, %v1357_v44  ;;  %2522 = vpow2.f32 %v1477_v20 }
 0x3aa   :  { %2524 = vpow2.f32 %v1479_v31  ;;  %v1481_v28 = vmul.f32 1.442695, %v1447_v29 }
 0x3ab   :  { %v1363_v6 = vpop.xlane.xlu1 %1362  ;;  %v1360_v37 = vpop.xlane.xlu0 %1359 }
 0x3ac   :  { %2526 = vpow2.f32 %v1481_v28  ;;  %v1449_v48 = vsub.f32 %v3198_v30, %v1363_v6  ;;  %v1448_v56 = vsub.f32 %v3186_v45, %v1360_v37 }
 0x3ae   :  { %v1483_v27 = vmul.f32 1.442695, %v1448_v56  ;;  %v1485_v2 = vmul.f32 1.442695, %v1449_v48 }
 0x3af   :  { %v1369_v0 = vpop.xlane.xlu1 %1368  ;;  %v1366_v58 = vpop.xlane.xlu0 %1365 }
 0x3b0   :  { %v1451_v41 = vsub.f32 %v3207_v57, %v1369_v0  ;;  %v1450_v9 = vsub.f32 %v3212_v61, %v1366_v58  ;;  %2528 = vpow2.f32 %v1483_v27 }
 0x3b1   :  { %2530 = vpow2.f32 %v1485_v2 }
 0x3b2   :  { %v1489_v38 = vmul.f32 1.442695, %v1451_v41  ;;  %v1487_v22 = vmul.f32 1.442695, %v1450_v9  ;;  %v2523_v24 = vpop.eup %2522 }
 0x3b3   :  { %v1372_v34 = vpop.xlane.xlu0 %1371  ;;  %v1541_v20 = vsel %vm889_vm0, %v2523_v24, 0.0 }
 0x3b4   :  { %v2525_v26 = vpop.eup %2524  ;;  %2532 = vpow2.f32 %v1489_v38  ;;  %v1452_v30 = vsub.f32 %v3223_v1, %v1372_v34 }
 0x3b5   :  { %2534 = vpow2.f32 %v1487_v22  ;;  %v1637_v45 = vpack.c.bf16 %v2525_v26, %v2523_v24  ;;  %v1544_v6 = vsel %vm889_vm0, %v2525_v26, 0.0 }
 0x3b6   :  { %v2527_v49 = vpop.eup %2526  ;;  %v1491_v52 = vmul.f32 1.442695, %v1452_v30 }
 0x3b7   :  { %2290 = vmatprep.mubr.msk.bf16.mxu1 %vm889_vm0, %v1637_v45  ;;  %v1547_v57 = vsel %vm889_vm0, %v2527_v49, 0.0 }
 0x3b8   :  { %2536 = vpow2.f32 %v1491_v52  ;;  %1548 = vadd.xlane.f32.xlu1 %v1547_v57 }
 0x3ba   :  { %v2529_v61 = vpop.eup %2528 }
 0x3bb   :  { %v1638_v23 = vpack.c.bf16 %v2529_v61, %v2527_v49  ;;  %v1550_v44 = vsel %vm889_vm0, %v2529_v61, 0.0  ;;  %v2531_v31 = vpop.eup %2530 }
 0x3bc   :  { %1542 = vadd.xlane.f32.xlu1 %v1541_v20  ;;  %1551 = vadd.xlane.f32.xlu0 %v1550_v44  ;;  %v1553_v27 = vsel %vm889_vm0, %v2531_v31, 0.0 }
 0x3bd   :  { %2291 = vmatmul.mubr.msk.bf16.vlgmr.msra.gmra.mrb[60].mxu1 %vm889_vm0, %v1638_v23 }
 0x3be   :  { %v2533_v1 = vpop.eup %2532  ;;  %2299 = vmatpush3.bf16.msra.mxu1 %v3021_v11 }
 0x3bf   :  { %v2535_v29 = vpop.eup %2534  ;;  %v1559_v28 = vsel %vm889_vm0, %v2533_v1, 0.0  ;;  %2300 = vmatprep.subr.bf16.mxu1 %v3027_v18 }
 0x3c0   :  { %1560 = vadd.xlane.f32.xlu1 %v1559_v28  ;;  %v1639_v37 = vpack.c.bf16 %v2535_v29, %v2531_v31  ;;  %1545 = vadd.xlane.f32.xlu0 %v1544_v6  ;;  %v1556_v24 = vsel %vm889_vm0, %v2535_v29, 0.0 }
 0x3c2   :  { %v2537_v48 = vpop.eup %2536  ;;  %2294 = vmatprep.mubr.msk.bf16.mxu1 %vm889_vm0, %v1639_v37  ;;  %2301 = vmatpush3.bf16.msra.mxu1 %v3027_v18 }
 0x3c3   :  { %v1375_v56 = vpop.xlane.xlu1 %1374  ;;  %v1562_v2 = vsel %vm889_vm0, %v2537_v48, 0.0  ;;  %v1640_v11 = vpack.c.bf16 %v2537_v48, %v2533_v1  ;;  %2302 = vmatprep.subr.bf16.mxu1 %v3033_v36 }
 0x3c4   :  { %v1453_v0 = vsub.f32 %v3230_v4, %v1375_v56  ;;  %1554 = vadd.xlane.f32.xlu1 %v1553_v27  ;;  %1563 = vadd.xlane.f32.xlu0 %v1562_v2 }
 0x3c5   :  { %v1378_v58 = vpop.xlane.xlu0 %1377  ;;  %2295 = vmatmul.mubr.msk.bf16.gmra.mrb[64].mxu1 %vm889_vm0, %v1640_v11 }
 0x3c6   :  { %v1493_v41 = vmul.f32 1.442695, %v1453_v0  ;;  %v1454_v9 = vsub.f32 %v3242_v12, %v1378_v58  ;;  %2303 = vmatpush3.bf16.msra.mxu1 %v3033_v36 }
 0x3c7   :  { %v1381_v18 = vpop.xlane.xlu1 %1380  ;;  %2304 = vmatprep.subr.bf16.mxu1 %v3039_v42 }
 0x3c8   :  { %v1495_v38 = vmul.f32 1.442695, %v1454_v9  ;;  %v1455_v22 = vsub.f32 %v3237_v10, %v1381_v18  ;;  %2538 = vpow2.f32 %v1493_v41  ;;  %1557 = vadd.xlane.f32.xlu0 %v1556_v24 }
 0x3c9   :  { %v1384_v4 = vpop.xlane.xlu0 %1383 }
 0x3ca   :  { %2540 = vpow2.f32 %v1495_v38  ;;  %v1497_v34 = vmul.f32 1.442695, %v1455_v22  ;;  %v1456_v26 = vsub.f32 %v3249_v14, %v1384_v4  ;;  %2305 = vmatpush3.bf16.msra.mxu1 %v3039_v42 }
 0x3cb   :  { %v1387_v12 = vpop.xlane.xlu1 %1386  ;;  %2314 = vmatprep.subr.bf16.mxu1 %v3045_v46 }
 0x3cc   :  { %2542 = vpow2.f32 %v1497_v34  ;;  %v1499_v36 = vmul.f32 1.442695, %v1456_v26  ;;  %v1457_v30 = vsub.f32 %v3258_v33, %v1387_v12 }
 0x3cd   :  { %v1390_v45 = vpop.xlane.xlu0 %1389 }
 0x3ce   :  { %2544 = vpow2.f32 %v1499_v36  ;;  %v1501_v10 = vmul.f32 1.442695, %v1457_v30  ;;  %v1458_v49 = vsub.f32 %v3270_v43, %v1390_v45 }
 0x3cf   :  { %v1393_v52 = vpop.xlane.xlu1 %1392 }
 0x3d0   :  { %v1503_v57 = vmul.f32 1.442695, %v1458_v49  ;;  %v1459_v61 = vsub.f32 %v3265_v59, %v1393_v52  ;;  %2546 = vpow2.f32 %v1501_v10 }
 0x3d1   :  { %v1396_v14 = vpop.xlane.xlu0 %1395 }
 0x3d2   :  { %2548 = vpow2.f32 %v1503_v57  ;;  %v1505_v42 = vmul.f32 1.442695, %v1459_v61  ;;  %v1460_v20 = vsub.f32 %v3277_v35, %v1396_v14  ;;  %v2539_v23 = vpop.eup %2538 }
 0x3d3   :  { %v1565_v35 = vsel %vm889_vm0, %v2539_v23, 0.0 }
 0x3d4   :  { %v2541_v44 = vpop.eup %2540  ;;  %2550 = vpow2.f32 %v1505_v42  ;;  %v1507_v31 = vmul.f32 1.442695, %v1460_v20 }
 0x3d5   :  { %v1641_v33 = vpack.c.bf16 %v2541_v44, %v2539_v23  ;;  %v1568_v48 = vsel %vm889_vm0, %v2541_v44, 0.0 }
 0x3d6   :  { %v2543_v1 = vpop.eup %2542  ;;  %2552 = vpow2.f32 %v1507_v31 }
 0x3d7   :  { %2306 = vmatprep.mubr.msk.bf16.mxu1 %vm889_vm0, %v1641_v33  ;;  %v1571_v43 = vsel %vm889_vm0, %v2543_v1, 0.0 }
 0x3d8   :  { %v2545_v29 = vpop.eup %2544  ;;  %1572 = vadd.xlane.f32.xlu1 %v1571_v43 }
 0x3d9   :  { %v1642_v59 = vpack.c.bf16 %v2545_v29, %v2543_v1  ;;  %v1574_v28 = vsel %vm889_vm0, %v2545_v29, 0.0 }
 0x3da   :  { %1575 = vadd.xlane.f32.xlu0 %v1574_v28  ;;  %v2547_v6 = vpop.eup %2546 }
 0x3db   :  { %2307 = vmatmul.mubr.msk.bf16.vlgmr.msra.gmra.mrb[68].mxu1 %vm889_vm0, %v1642_v59  ;;  %v1577_v41 = vsel %vm889_vm0, %v2547_v6, 0.0 }
 0x3dc   :  { %v2549_v37 = vpop.eup %2548  ;;  %2315 = vmatpush3.bf16.msra.mxu1 %v3045_v46  ;;  %1566 = vadd.xlane.f32.xlu1 %v1565_v35 }
 0x3dd   :  { %2316 = vmatprep.subr.bf16.mxu1 %v2967_v40  ;;  %v1643_v56 = vpack.c.bf16 %v2549_v37, %v2547_v6  ;;  %v1580_v18 = vsel %vm889_vm0, %v2549_v37, 0.0 }
 0x3de   :  { %v2551_v27 = vpop.eup %2550  ;;  %1569 = vadd.xlane.f32.xlu0 %v1568_v48 }
 0x3df   :  { %2310 = vmatprep.mubr.msk.bf16.mxu1 %vm889_vm0, %v1643_v56  ;;  %v1583_v2 = vsel %vm889_vm0, %v2551_v27, 0.0 }
 0x3e0   :  { %v2553_v11 = vpop.eup %2552  ;;  %2317 = vmatpush3.bf16.msra.mxu1 %v2967_v40  ;;  %1584 = vadd.xlane.f32.xlu1 %v1583_v2 }
 0x3e1   :  { %2318 = vmatprep.subr.bf16.mxu1 %v2971_v50  ;;  %v1586_v46 = vsel %vm889_vm0, %v2553_v11, 0.0  ;;  %v1644_v0 = vpack.c.bf16 %v2553_v11, %v2551_v27 }
 0x3e2   :  { %1587 = vadd.xlane.f32.xlu0 %v1586_v46 }
 0x3e3   :  { %2311 = vmatmul.mubr.msk.bf16.gmra.mrb[72].mxu1 %vm889_vm0, %v1644_v0  ;;  %v1399_v58 = vpop.xlane.xlu1 %1398 }
 0x3e4   :  { %v1461_v9 = vsub.f32 %v3286_v47, %v1399_v58  ;;  %2319 = vmatpush3.bf16.msra.mxu1 %v2971_v50  ;;  %1578 = vadd.xlane.f32.xlu1 %v1577_v41 }
 0x3e5   :  { %2320 = vmatprep.subr.bf16.mxu1 %v2975_v60  ;;  %v1402_v40 = vpop.xlane.xlu0 %1401 }
 0x3e6   :  { %v1509_v38 = vmul.f32 1.442695, %v1461_v9  ;;  %v1462_v22 = vsub.f32 %v3298_v55, %v1402_v40  ;;  %1581 = vadd.xlane.f32.xlu0 %v1580_v18 }
 0x3e7   :  { %v1405_v24 = vpop.xlane.xlu1 %1404 }
 0x3e8   :  { %v1511_v4 = vmul.f32 1.442695, %v1462_v22  ;;  %v1463_v34 = vsub.f32 %v3293_v54, %v1405_v24  ;;  %2321 = vmatpush3.bf16.msra.mxu1 %v2975_v60  ;;  %2554 = vpow2.f32 %v1509_v38 }
 0x3e9   :  { %2330 = vmatprep.subr.bf16.mxu1 %v2979_v7  ;;  %v1408_v50 = vpop.xlane.xlu0 %1407 }
 0x3ea   :  { %2556 = vpow2.f32 %v1511_v4  ;;  %v1513_v47 = vmul.f32 1.442695, %v1463_v34  ;;  %v1464_v26 = vsub.f32 %v3305_v63, %v1408_v50 }
 0x3eb   :  { %v1411_v12 = vpop.xlane.xlu1 %1410 }
 0x3ec   :  { %2558 = vpow2.f32 %v1513_v47  ;;  %v1515_v36 = vmul.f32 1.442695, %v1464_v26  ;;  %v1465_v55 = vsub.f32 %v3314_v8, %v1411_v12 }
 0x3ed   :  { %v1414_v30 = vpop.xlane.xlu0 %1413 }
 0x3ee   :  { %2560 = vpow2.f32 %v1515_v36  ;;  %v1517_v45 = vmul.f32 1.442695, %v1465_v55  ;;  %v1466_v54 = vsub.f32 %v3326_v32, %v1414_v30 }
 0x3ef   :  { %v1417_v10 = vpop.xlane.xlu1 %1416 }
 0x3f0   :  { %v1519_v60 = vmul.f32 1.442695, %v1466_v54  ;;  %v1467_v49 = vsub.f32 %v3321_v17, %v1417_v10  ;;  %2562 = vpow2.f32 %v1517_v45 }
 0x3f1   :  { %v1420_v52 = vpop.xlane.xlu0 %1419 }
 0x3f2   :  { %2564 = vpow2.f32 %v1519_v60  ;;  %v1521_v57 = vmul.f32 1.442695, %v1467_v49  ;;  %v1468_v63 = vsub.f32 %v3333_v39, %v1420_v52  ;;  %v2555_v61 = vpop.eup %2554 }
 0x3f3   :  { %v1589_v39 = vsel %vm889_vm0, %v2555_v61, 0.0 }
 0x3f4   :  { %v2557_v14 = vpop.eup %2556  ;;  %2566 = vpow2.f32 %v1521_v57  ;;  %v1523_v42 = vmul.f32 1.442695, %v1468_v63 }
 0x3f5   :  { %v1645_v8 = vpack.c.bf16 %v2557_v14, %v2555_v61  ;;  %v1592_v1 = vsel %vm889_vm0, %v2557_v14, 0.0 }
 0x3f6   :  { %v2559_v20 = vpop.eup %2558  ;;  %2568 = vpow2.f32 %v1523_v42 }
 0x3f7   :  { %2322 = vmatprep.mubr.msk.bf16.mxu1 %vm889_vm0, %v1645_v8  ;;  %v1595_v32 = vsel %vm889_vm0, %v2559_v20, 0.0 }
 0x3f8   :  { %v2561_v23 = vpop.eup %2560  ;;  %1596 = vadd.xlane.f32.xlu1 %v1595_v32 }
 0x3f9   :  { %v1646_v17 = vpack.c.bf16 %v2561_v23, %v2559_v20  ;;  %v1598_v44 = vsel %vm889_vm0, %v2561_v23, 0.0 }
 0x3fa   :  { %1599 = vadd.xlane.f32.xlu0 %v1598_v44  ;;  %v2563_v31 = vpop.eup %2562 }
 0x3fb   :  { %2323 = vmatmul.mubr.msk.bf16.vlgmr.msra.gmra.mrb[76].mxu1 %vm889_vm0, %v1646_v17  ;;  %v1601_v37 = vsel %vm889_vm0, %v2563_v31, 0.0 }
 0x3fc   :  { %v2565_v33 = vpop.eup %2564  ;;  %2331 = vmatpush3.bf16.msra.mxu1 %v2979_v7  ;;  %1590 = vadd.xlane.f32.xlu1 %v1589_v39 }
 0x3fd   :  { %2332 = vmatprep.subr.bf16.mxu1 %v2983_v16  ;;  %v1647_v43 = vpack.c.bf16 %v2565_v33, %v2563_v31  ;;  %v1604_v56 = vsel %vm889_vm0, %v2565_v33, 0.0 }
 0x3fe   :  { %v2567_v29 = vpop.eup %2566  ;;  %1593 = vadd.xlane.f32.xlu0 %v1592_v1 }
 0x3ff   :  { %2326 = vmatprep.mubr.msk.bf16.mxu1 %vm889_vm0, %v1647_v43  ;;  %v1607_v59 = vsel %vm889_vm0, %v2567_v29, 0.0 }
 0x400   :  { %v2569_v28 = vpop.eup %2568  ;;  %2333 = vmatpush3.bf16.msra.mxu1 %v2983_v16  ;;  %1608 = vadd.xlane.f32.xlu1 %v1607_v59 }
 0x401   :  { %2334 = vmatprep.subr.bf16.mxu1 %v2987_v19  ;;  %v1610_v7 = vsel %vm889_vm0, %v2569_v28, 0.0  ;;  %v1648_v6 = vpack.c.bf16 %v2569_v28, %v2567_v29 }
 0x402   :  { %1611 = vadd.xlane.f32.xlu0 %v1610_v7 }
 0x403   :  { %v1423_v35 = vpop.xlane.xlu1 %1422  ;;  %2327 = vmatmul.mubr.msk.bf16.gmra.mrb[80].mxu1 %vm889_vm0, %v1648_v6 }
 0x404   :  { %v1469_v48 = vsub.f32 %v3342_v21, %v1423_v35  ;;  %2335 = vmatpush3.bf16.msra.mxu1 %v2987_v19  ;;  %1602 = vadd.xlane.f32.xlu1 %v1601_v37 }
 0x405   :  { %2336 = vmatprep.subr.bf16.mxu1 %v2995_v25  ;;  %v1426_v16 = vpop.xlane.xlu0 %1425 }
 0x406   :  { %v1525_v27 = vmul.f32 1.442695, %v1469_v48  ;;  %v1470_v2 = vsub.f32 %v3354_v53, %v1426_v16  ;;  %1605 = vadd.xlane.f32.xlu0 %v1604_v56 }
 0x407   :  { %v1429_v11 = vpop.xlane.xlu1 %1428 }
 0x408   :  { %v1527_v46 = vmul.f32 1.442695, %v1470_v2  ;;  %v1471_v0 = vsub.f32 %v3349_v51, %v1429_v11  ;;  %2337 = vmatpush3.bf16.msra.mxu1 %v2995_v25  ;;  %2570 = vpow2.f32 %v1525_v27 }
 0x409   :  { %v1432_v21 = vpop.xlane.xlu0 %1431 }
 0x40a   :  { %2572 = vpow2.f32 %v1527_v46  ;;  %v1529_v19 = vmul.f32 1.442695, %v1471_v0  ;;  %v1472_v58 = vsub.f32 %v3361_v62, %v1432_v21 }
 0x40b   :  { %v1435_v41 = vpop.xlane.xlu1 %1434 }
 0x40c   :  { %2574 = vpow2.f32 %v1529_v19  ;;  %v1531_v9 = vmul.f32 1.442695, %v1472_v58  ;;  %v1473_v40 = vsub.f32 %v3370_v3, %v1435_v41 }
 0x40d   :  { %v1438_v18 = vpop.xlane.xlu0 %1437 }
 0x40e   :  { %2576 = vpow2.f32 %v1531_v9  ;;  %v1533_v53 = vmul.f32 1.442695, %v1473_v40  ;;  %v1474_v38 = vsub.f32 %v3382_v15, %v1438_v18 }
 0x40f   :  { %v1441_v22 = vpop.xlane.xlu1 %1440 }
 0x410   :  { %v1535_v51 = vmul.f32 1.442695, %v1474_v38  ;;  %v1475_v25 = vsub.f32 %v3377_v13, %v1441_v22  ;;  %2578 = vpow2.f32 %v1533_v53 }
 0x411   :  { %v1444_v24 = vpop.xlane.xlu0 %1443 }
 0x412   :  { %2580 = vpow2.f32 %v1535_v51  ;;  %v1537_v4 = vmul.f32 1.442695, %v1475_v25  ;;  %v1476_v62 = vsub.f32 %v3389_v5, %v1444_v24  ;;  %v2571_v34 = vpop.eup %2570 }
 0x413   :  { %v1613_v5 = vsel %vm889_vm0, %v2571_v34, 0.0 }
 0x414   :  { %v2573_v50 = vpop.eup %2572  ;;  %v1539_v47 = vmul.f32 1.442695, %v1476_v62  ;;  %2582 = vpow2.f32 %v1537_v4 }
 0x415   :  { %v1649_v3 = vpack.c.bf16 %v2573_v50, %v2571_v34  ;;  %v1616_v45 = vsel %vm889_vm0, %v2573_v50, 0.0 }
 0x416   :  { %v2575_v26 = vpop.eup %2574  ;;  %2584 = vpow2.f32 %v1539_v47 }
 0x417   :  { %2338 = vmatprep.mubr.msk.bf16.mxu1 %vm889_vm0, %v1649_v3  ;;  %v1619_v15 = vsel %vm889_vm0, %v2575_v26, 0.0 }
 0x418   :  { %v2577_v12 = vpop.eup %2576  ;;  %1620 = vadd.xlane.f32.xlu1 %v1619_v15 }
 0x419   :  { %v1650_v13 = vpack.c.bf16 %v2577_v12, %v2575_v26  ;;  %v1622_v36 = vsel %vm889_vm0, %v2577_v12, 0.0 }
 0x41a   :  { %1623 = vadd.xlane.f32.xlu0 %v1622_v36  ;;  %v2579_v55 = vpop.eup %2578 }
 0x41b   :  { %2339 = vmatmul.mubr.msk.bf16.vlgmr.msra.gmra.mrb[84].mxu1 %vm889_vm0, %v1650_v13  ;;  %v1625_v60 = vsel %vm889_vm0, %v2579_v55, 0.0 }
 0x41c   :  { %v2581_v30 = vpop.eup %2580  ;;  %1614 = vadd.xlane.f32.xlu1 %v1613_v5 }
 0x41d   :  { %v1651_v54 = vpack.c.bf16 %v2581_v30, %v2579_v55  ;;  %v1628_v52 = vsel %vm889_vm0, %v2581_v30, 0.0 }
 0x41e   :  { %1617 = vadd.xlane.f32.xlu0 %v1616_v45  ;;  %v2583_v10 = vpop.eup %2582 }
 0x41f   :  { %2342 = vmatprep.mubr.msk.bf16.mxu1 %vm889_vm0, %v1651_v54  ;;  %v1631_v63 = vsel %vm889_vm0, %v2583_v10, 0.0 }
 0x420   :  { %v2585_v49 = vpop.eup %2584  ;;  %1626 = vadd.xlane.f32.xlu1 %v1625_v60 }
 0x421   :  { %v1652_v57 = vpack.c.bf16 %v2585_v49, %v2583_v10  ;;  %v1634_v61 = vsel %vm889_vm0, %v2585_v49, 0.0 }
 0x422   :  { %1629 = vadd.xlane.f32.xlu0 %v1628_v52 }
 0x423   :  { %2343 = vmatmul.mubr.msk.bf16.gmra.mrb[88].mxu1 %vm889_vm0, %v1652_v57 }
 0x424   :  { %1632 = vadd.xlane.f32.xlu1 %v1631_v63 }
 0x426   :  { %1635 = vadd.xlane.f32.xlu0 %v1634_v61 }
 0x445   :  { %v1549_v14 = vpop.xlane.xlu1 %1548 }
 0x446   :  { %2586 = vrcp.f32 %v1549_v14 }
 0x449   :  { %v1552_v42 = vpop.xlane.xlu0 %1551  ;;  %v1543_v8 = vpop.xlane.xlu1 %1542 }
 0x44a   :  { %2588 = vrcp.f32 %v1543_v8 }
 0x44b   :  { %2590 = vrcp.f32 %v1552_v42 }
 0x44d   :  { %v1546_v20 = vpop.xlane.xlu0 %1545  ;;  %v1561_v32 = vpop.xlane.xlu1 %1560 }
 0x44e   :  { %2592 = vrcp.f32 %v1546_v20 }
 0x44f   :  { %2594 = vrcp.f32 %v1561_v32 }
 0x450   :  { %v2587_v31 = vpop.eup %2586 }
 0x451   :  { %v1564_v23 = vpop.xlane.xlu0 %1563  ;;  %v1555_v17 = vpop.xlane.xlu1 %1554 }
 0x452   :  { %2596 = vrcp.f32 %v1555_v17 }
 0x453   :  { %2598 = vrcp.f32 %v1564_v23 }
 0x454   :  { %v2589_v33 = vpop.eup %2588 }
 0x455   :  { %v1558_v44 = vpop.xlane.xlu0 %1557  ;;  %v2591_v29 = vpop.eup %2590 }
 0x456   :  { %2600 = vrcp.f32 %v1558_v44 }
 0x458   :  { %v2593_v7 = vpop.eup %2592 }
 0x459   :  { %v2595_v16 = vpop.eup %2594 }
 0x45c   :  { %v2597_v27 = vpop.eup %2596 }
 0x45d   :  { %v2599_v0 = vpop.eup %2598 }
 0x460   :  { %v2601_v58 = vpop.eup %2600 }
 0x465   :  { %v1573_v48 = vpop.xlane.xlu1 %1572 }
 0x466   :  { %2602 = vrcp.f32 %v1573_v48 }
 0x467   :  { %v1576_v2 = vpop.xlane.xlu0 %1575 }
 0x469   :  { %v1567_v18 = vpop.xlane.xlu1 %1566 }
 0x46a   :  { %2604 = vrcp.f32 %v1567_v18 }
 0x46b   :  { %v1570_v53 = vpop.xlane.xlu0 %1569  ;;  %2606 = vrcp.f32 %v1576_v2 }
 0x46c   :  { %2608 = vrcp.f32 %v1570_v53 }
 0x46d   :  { %v1585_v38 = vpop.xlane.xlu1 %1584 }
 0x46e   :  { %2610 = vrcp.f32 %v1585_v38 }
 0x46f   :  { %v1588_v22 = vpop.xlane.xlu0 %1587 }
 0x470   :  { %v2603_v24 = vpop.eup %2602 }
 0x471   :  { %v1579_v51 = vpop.xlane.xlu1 %1578 }
 0x472   :  { %2612 = vrcp.f32 %v1579_v51 }
 0x473   :  { %v1582_v25 = vpop.xlane.xlu0 %1581  ;;  %2614 = vrcp.f32 %v1588_v22 }
 0x474   :  { %v2605_v62 = vpop.eup %2604  ;;  %2616 = vrcp.f32 %v1582_v25 }
 0x475   :  { %v2607_v47 = vpop.eup %2606 }
 0x476   :  { %v2609_v15 = vpop.eup %2608 }
 0x478   :  { %v2611_v55 = vpop.eup %2610 }
 0x47c   :  { %v2613_v30 = vpop.eup %2612 }
 0x47d   :  { %v2615_v10 = vpop.eup %2614 }
 0x47e   :  { %v2617_v57 = vpop.eup %2616 }
 0x485   :  { %v1597_v60 = vpop.xlane.xlu1 %1596 }
 0x486   :  { %2618 = vrcp.f32 %v1597_v60 }
 0x487   :  { %v1600_v14 = vpop.xlane.xlu0 %1599 }
 0x489   :  { %v1591_v8 = vpop.xlane.xlu1 %1590 }
 0x48a   :  { %2620 = vrcp.f32 %v1591_v8 }
 0x48b   :  { %v1594_v20 = vpop.xlane.xlu0 %1593  ;;  %2622 = vrcp.f32 %v1600_v14 }
 0x48c   :  { %2624 = vrcp.f32 %v1594_v20 }
 0x48d   :  { %v1609_v32 = vpop.xlane.xlu1 %1608 }
 0x48e   :  { %2626 = vrcp.f32 %v1609_v32 }
 0x48f   :  { %v1612_v23 = vpop.xlane.xlu0 %1611 }
 0x490   :  { %v2292_v39 = vpop.f32.mrb[60].mxu1 }
 0x491   :  { %v1995_v1 = vmul.f32 %v2587_v31, %v2292_v39  ;;  %v1699_v43 = vpop.f32.mrb[61].mxu1  ;;  %v1603_v17 = vpop.xlane.xlu1 %1602 }
 0x492   :  { %v1993_v59 = vmul.f32 %v2589_v33, %v1699_v43  ;;  %v2293_v28 = vpop.f32.mrb[62].mxu1  ;;  %2628 = vrcp.f32 %v1603_v17  ;;  %v2619_v31 = vpop.eup %2618 }
 0x493   :  { %2027 = vst.msk [vmem:[#allocation5 + $0x10] sm:$0xff] %vm889_vm0, %v1995_v1  ;;  %v1996_v6 = vmul.f32 %v2591_v29, %v2293_v28  ;;  %v1702_v35 = vpop.f32.mrb[63].mxu1  ;;  %v1606_v44 = vpop.xlane.xlu0 %1605  ;;  %2630 = vrcp.f32 %v1612_v23 }
 0x494   :  { %2025 = vst.msk [vmem:[#allocation5] sm:$0xff] %vm889_vm0, %v1993_v59  ;;  %v1994_v37 = vmul.f32 %v2593_v7, %v1702_v35  ;;  %v2621_v33 = vpop.eup %2620  ;;  %2632 = vrcp.f32 %v1606_v44 }
 0x495   :  { %2028 = vst.msk [vmem:[#allocation5 + $0x18] sm:$0xff] %vm889_vm0, %v1996_v6  ;;  %v2623_v29 = vpop.eup %2622 }
 0x496   :  { %2026 = vst.msk [vmem:[#allocation5 + $0x8] sm:$0xff] %vm889_vm0, %v1994_v37  ;;  %v2625_v7 = vpop.eup %2624 }
 0x498   :  { %v2296_v56 = vpop.f32.mrb[64].mxu1  ;;  %v2627_v48 = vpop.eup %2626 }
 0x499   :  { %v1999_v11 = vmul.f32 %v2595_v16, %v2296_v56  ;;  %v1715_v46 = vpop.f32.mrb[65].mxu1 }
 0x49a   :  { %v1997_v21 = vmul.f32 %v2597_v27, %v1715_v46  ;;  %v2297_v19 = vpop.f32.mrb[66].mxu1 }
 0x49b   :  { %2031 = vst.msk [vmem:[#allocation5 + $0x30] sm:$0xff] %vm889_vm0, %v1999_v11  ;;  %v2000_v41 = vmul.f32 %v2599_v0, %v2297_v19  ;;  %v1718_v9 = vpop.f32.mrb[67].mxu1 }
 0x49c   :  { %2029 = vst.msk [vmem:[#allocation5 + $0x20] sm:$0xff] %vm889_vm0, %v1997_v21  ;;  %v1998_v40 = vmul.f32 %v2601_v58, %v1718_v9  ;;  %v2629_v56 = vpop.eup %2628 }
 0x49d   :  { %2032 = vst.msk [vmem:[#allocation5 + $0x38] sm:$0xff] %vm889_vm0, %v2000_v41  ;;  %v2631_v46 = vpop.eup %2630 }
 0x49e   :  { %2030 = vst.msk [vmem:[#allocation5 + $0x28] sm:$0xff] %vm889_vm0, %v1998_v40  ;;  %v2633_v19 = vpop.eup %2632 }
 0x4a5   :  { %v1621_v27 = vpop.xlane.xlu1 %1620 }
 0x4a6   :  { %2634 = vrcp.f32 %v1621_v27 }
 0x4a7   :  { %v1624_v58 = vpop.xlane.xlu0 %1623 }
 0x4a9   :  { %v1615_v18 = vpop.xlane.xlu1 %1614 }
 0x4aa   :  { %2636 = vrcp.f32 %v1615_v18 }
 0x4ab   :  { %v1618_v53 = vpop.xlane.xlu0 %1617  ;;  %2638 = vrcp.f32 %v1624_v58 }
 0x4ac   :  { %2640 = vrcp.f32 %v1618_v53 }
 0x4ad   :  { %v1627_v38 = vpop.xlane.xlu1 %1626 }
 0x4ae   :  { %v2308_v4 = vpop.f32.mrb[68].mxu1 }
 0x4af   :  { %v2003_v34 = vmul.f32 %v2603_v24, %v2308_v4  ;;  %v1776_v50 = vpop.f32.mrb[69].mxu1  ;;  %v1630_v22 = vpop.xlane.xlu0 %1629 }
 0x4b0   :  { %v2001_v3 = vmul.f32 %v2605_v62, %v1776_v50  ;;  %v2309_v26 = vpop.f32.mrb[70].mxu1  ;;  %v2635_v24 = vpop.eup %2634 }
 0x4b1   :  { %2035 = vst.msk [vmem:[#allocation5 + $0x50] sm:$0xff] %vm889_vm0, %v2003_v34  ;;  %v2004_v12 = vmul.f32 %v2607_v47, %v2309_v26  ;;  %v1779_v13 = vpop.f32.mrb[71].mxu1  ;;  %v1633_v51 = vpop.xlane.xlu1 %1632 }
 0x4b2   :  { %2033 = vst.msk [vmem:[#allocation5 + $0x40] sm:$0xff] %vm889_vm0, %v2001_v3  ;;  %v2002_v36 = vmul.f32 %v2609_v15, %v1779_v13  ;;  %2642 = vrcp.f32 %v1633_v51 }
 0x4b3   :  { %2036 = vst.msk [vmem:[#allocation5 + $0x58] sm:$0xff] %vm889_vm0, %v2004_v12  ;;  %v1636_v25 = vpop.xlane.xlu0 %1635  ;;  %2644 = vrcp.f32 %v1627_v38 }
 0x4b4   :  { %2034 = vst.msk [vmem:[#allocation5 + $0x48] sm:$0xff] %vm889_vm0, %v2002_v36  ;;  %2646 = vrcp.f32 %v1636_v25  ;;  %v2637_v62 = vpop.eup %2636 }
 0x4b5   :  { %2648 = vrcp.f32 %v1630_v22  ;;  %v2639_v47 = vpop.eup %2638 }
 0x4b6   :  { %v2312_v5 = vpop.f32.mrb[72].mxu1  ;;  %v2641_v15 = vpop.eup %2640 }
 0x4b7   :  { %v2007_v45 = vmul.f32 %v2611_v55, %v2312_v5  ;;  %v1792_v54 = vpop.f32.mrb[73].mxu1 }
 0x4b8   :  { %v2005_v49 = vmul.f32 %v2613_v30, %v1792_v54  ;;  %v2313_v52 = vpop.f32.mrb[74].mxu1 }
 0x4b9   :  { %2039 = vst.msk [vmem:[#allocation5 + $0x70] sm:$0xff] %vm889_vm0, %v2007_v45  ;;  %v2008_v63 = vmul.f32 %v2615_v10, %v2313_v52  ;;  %v1795_v61 = vpop.f32.mrb[75].mxu1 }
 0x4ba   :  { %2037 = vst.msk [vmem:[#allocation5 + $0x60] sm:$0xff] %vm889_vm0, %v2005_v49  ;;  %v2006_v42 = vmul.f32 %v2617_v57, %v1795_v61 }
 0x4bb   :  { %2040 = vst.msk [vmem:[#allocation5 + $0x78] sm:$0xff] %vm889_vm0, %v2008_v63 }
 0x4bc   :  { %2038 = vst.msk [vmem:[#allocation5 + $0x68] sm:$0xff] %vm889_vm0, %v2006_v42  ;;  %v2643_v55 = vpop.eup %2642 }
 0x4bd   :  { %v2645_v30 = vpop.eup %2644 }
 0x4be   :  { %v2647_v10 = vpop.eup %2646 }
 0x4bf   :  { %v2649_v52 = vpop.eup %2648 }
 0x4ce   :  { %v2324_v39 = vpop.f32.mrb[76].mxu1 }
 0x4cf   :  { %v2011_v1 = vmul.f32 %v2619_v31, %v2324_v39  ;;  %v1853_v43 = vpop.f32.mrb[77].mxu1 }
 0x4d0   :  { %v2009_v59 = vmul.f32 %v2621_v33, %v1853_v43  ;;  %v2325_v28 = vpop.f32.mrb[78].mxu1 }
 0x4d1   :  { %2043 = vst.msk [vmem:[#allocation5 + $0x90] sm:$0xff] %vm889_vm0, %v2011_v1  ;;  %v2012_v6 = vmul.f32 %v2623_v29, %v2325_v28  ;;  %v1856_v35 = vpop.f32.mrb[79].mxu1 }
 0x4d2   :  { %2041 = vst.msk [vmem:[#allocation5 + $0x80] sm:$0xff] %vm889_vm0, %v2009_v59  ;;  %v2010_v37 = vmul.f32 %v2625_v7, %v1856_v35 }
 0x4d3   :  { %2044 = vst.msk [vmem:[#allocation5 + $0x98] sm:$0xff] %vm889_vm0, %v2012_v6 }
 0x4d4   :  { %2042 = vst.msk [vmem:[#allocation5 + $0x88] sm:$0xff] %vm889_vm0, %v2010_v37 }
 0x4d6   :  { %v2328_v16 = vpop.f32.mrb[80].mxu1 }
 0x4d7   :  { %v2015_v2 = vmul.f32 %v2627_v48, %v2328_v16  ;;  %v1869_v11 = vpop.f32.mrb[81].mxu1 }
 0x4d8   :  { %v2013_v0 = vmul.f32 %v2629_v56, %v1869_v11  ;;  %v2329_v21 = vpop.f32.mrb[82].mxu1 }
 0x4d9   :  { %2047 = vst.msk [vmem:[#allocation5 + $0xb0] sm:$0xff] %vm889_vm0, %v2015_v2  ;;  %v2016_v41 = vmul.f32 %v2631_v46, %v2329_v21  ;;  %v1872_v9 = vpop.f32.mrb[83].mxu1 }
 0x4da   :  { %2045 = vst.msk [vmem:[#allocation5 + $0xa0] sm:$0xff] %vm889_vm0, %v2013_v0  ;;  %v2014_v40 = vmul.f32 %v2633_v19, %v1872_v9 }
 0x4db   :  { %2048 = vst.msk [vmem:[#allocation5 + $0xb8] sm:$0xff] %vm889_vm0, %v2016_v41 }
 0x4dc   :  { %2046 = vst.msk [vmem:[#allocation5 + $0xa8] sm:$0xff] %vm889_vm0, %v2014_v40 }
 0x4ee   :  { %v2340_v4 = vpop.f32.mrb[84].mxu1 }
 0x4ef   :  { %v2019_v34 = vmul.f32 %v2635_v24, %v2340_v4  ;;  %v1930_v50 = vpop.f32.mrb[85].mxu1 }
 0x4f0   :  { %v2017_v3 = vmul.f32 %v2637_v62, %v1930_v50  ;;  %v2341_v26 = vpop.f32.mrb[86].mxu1 }
 0x4f1   :  { %2051 = vst.msk [vmem:[#allocation5 + $0xd0] sm:$0xff] %vm889_vm0, %v2019_v34  ;;  %v2020_v12 = vmul.f32 %v2639_v47, %v2341_v26  ;;  %v1933_v13 = vpop.f32.mrb[87].mxu1 }
 0x4f2   :  { %2049 = vst.msk [vmem:[#allocation5 + $0xc0] sm:$0xff] %vm889_vm0, %v2017_v3  ;;  %v2018_v36 = vmul.f32 %v2641_v15, %v1933_v13 }
 0x4f3   :  { %2052 = vst.msk [vmem:[#allocation5 + $0xd8] sm:$0xff] %vm889_vm0, %v2020_v12 }
 0x4f4   :  { %2050 = vst.msk [vmem:[#allocation5 + $0xc8] sm:$0xff] %vm889_vm0, %v2018_v36 }
 0x4f6   :  { %v2344_v5 = vpop.f32.mrb[88].mxu1 }
 0x4f7   :  { %v2023_v45 = vmul.f32 %v2643_v55, %v2344_v5  ;;  %v1946_v54 = vpop.f32.mrb[89].mxu1 }
 0x4f8   :  { %v2021_v60 = vmul.f32 %v2645_v30, %v1946_v54  ;;  %v2345_v49 = vpop.f32.mrb[90].mxu1 }
 0x4f9   :  { %2055 = vst.msk [vmem:[#allocation5 + $0xf0] sm:$0xff] %vm889_vm0, %v2023_v45  ;;  %v2024_v57 = vmul.f32 %v2647_v10, %v2345_v49  ;;  %v1949_v63 = vpop.f32.mrb[91].mxu1 }
 0x4fa   :  { %2053 = vst.msk [vmem:[#allocation5 + $0xe0] sm:$0xff] %vm889_vm0, %v2021_v60  ;;  %v2022_v61 = vmul.f32 %v2649_v52, %v1949_v63 }
 0x4fb   :  { %2056 = vst.msk [vmem:[#allocation5 + $0xf8] sm:$0xff] %vm889_vm0, %v2024_v57 }
 0x4fc   :  { %2054 = vst.msk [vmem:[#allocation5 + $0xe8] sm:$0xff] %vm889_vm0, %v2022_v61 }
 0x4fd   :  { %2683 = shalt.err (!%p2680_p12)
}
 0x4fe   :  { %s2684_s8 = scalar_lea.hbm %s3544_s2, 4096 }
 0x4ff   :  { %p2685_p13 = scmp.ne.s32.totalorder %s3544_s2, %s2684_s8  ;;  %p2688_p0 = scmp.lt.u32.totalorder %s2684_s8, %s3544_s2 }
 0x501   :  { %p2690_p1 = pnand %p2688_p0, %p2685_p13 }
 0x503   :  { %2693 = shalt.err (!%p2690_p1)
}
 0x504   :  { %s2704_s13 = smov 128   ;;  %s2705_s14 = smov 8  }
 0x505   :  { %2068 = dma.vmem_to_hbm [thread:$0]  %s2063_s4, 4096, %s3544_s2, [#allocation4], %s2704_s13, %s2704_s13, %s2705_s14  }
 0x506   :  { %2696 = dma.done.wait [#allocation4], 4096  }
 0x507   :  { %2697 = vsyncadd [#allocation4], 4294963200 }
 0x508   :  { %2072 = vsyncpa [#allocation3], 1 }
 0x509   :  { %2073 = vsyncpa [#allocation4], 1 }

</bundles_post_ra>
